<compile_context>
chip_gen: v6e
topology: v6e:2x2x1
jax: 0.10.0
libtpu: 0.0.40
codegen_flags: <defaults>
</compile_context>

<pallas_src>
import numpy as np
import jax
import jax.numpy as jnp
from jax import lax
from jax.experimental import pallas as pl
from jax.experimental.pallas import tpu as pltpu

# ----- deterministic hyper-parameters (toy sizes consistent with the module) -----
B = 2                      # molecules in the batch
A = 8                      # atoms per molecule
S = 4                      # chemical species
K = 16                     # radial shifts
D = S * K                  # 64 AEV features, feature index f = s*K + k  (neighbour-species major)
DIN = D + 1                # AEV + appended electronic-state scalar (original layout)
H1, H2 = 32, 16
SH1, SH2 = S * H1, S * H2  # 128, 64  (packed MLP widths)
RC = 5.2                   # radial cutoff
ETA = 16.0                 # Gaussian width
CELU_ALPHA = 0.1
SHIFT0 = 0.9
SHIFT_STEP = (RC - 0.3 - SHIFT0) / (K - 1)   # shifts are an affine function of k -> iota math


def _celu(x):
    return jnp.where(x > 0, x, CELU_ALPHA * (jnp.exp(jnp.minimum(x, 0.0) / CELU_ALPHA) - 1.0))


# ---------------------------------------------------------------------------
# Fused per-molecule kernel: radial AEV + state injection + packed per-species MLPs
# ---------------------------------------------------------------------------
def _state_net_kernel(atoms_ref, atomst_ref, state_ref,
                      w1_ref, b1_ref, w1s_ref, w2_ref, b2_ref, w3_ref, b3_ref,
                      out_ref):
    f32 = jnp.float32
    at = atoms_ref[0]                         # (A, 4) = [x, y, z, species]   (column form)
    att = atomst_ref[0]                       # (4, A)                         (row form)
    spec_col = at[:, 3:4]                     # (A, 1) species of atom i (exact small ints)
    spec_row = att[3:4, :]                    # (1, A) species of neighbour j

    # ---- geometry directly in (A, A) tiles: exact f32, no gather matmuls ----
    dx = at[:, 0:1] - att[0:1, :]             # (A, A)
    dy = at[:, 1:2] - att[1:2, :]
    dz = at[:, 2:3] - att[2:3, :]
    dist = jnp.sqrt(dx * dx + dy * dy + dz * dz)                         # (A, A)

    rr = lax.broadcasted_iota(jnp.int32, (A, A), 0)
    cc = lax.broadcasted_iota(jnp.int32, (A, A), 1)
    fc = jnp.where(dist < RC, 0.5 * jnp.cos(jnp.pi * dist / RC) + 0.5, 0.0)
    w_pair = jnp.where(rr != cc, fc, 0.0)                                # (A, A) self-pairs off

    # ---- Gaussian slab over the K shifts only (de-duplicated exp): (A, A, K) ----
    k_lane = lax.broadcasted_iota(jnp.int32, (A, A, K), 2).astype(f32)
    shifts = SHIFT0 + SHIFT_STEP * k_lane
    g = (0.25 * w_pair)[:, :, None] * jnp.exp(-ETA * (dist[:, :, None] - shifts) ** 2)

    # ---- per-species neighbour sum: exact-f32 sublane reduction, no MXU ----
    chunks = []
    for s in range(S):                                                   # S=4 is static
        mask_s = (spec_row == float(s)).astype(f32)                      # (1, A)
        chunks.append(jnp.sum(g * mask_s[:, :, None], axis=1))           # (A, K)
    aev = jnp.concatenate(chunks, axis=1)                                # (A, D) f = s*K + k

    # ---- packed per-species MLPs (electronic state folded into layer-1 bias) ----
    state_col = state_ref[0]                                             # (A, 1)
    h1 = _celu(jnp.dot(aev, w1_ref[...], preferred_element_type=f32)
               + b1_ref[...] + state_col * w1s_ref[...])                 # (A, 128)
    h2 = _celu(jnp.dot(h1, w2_ref[...], preferred_element_type=f32) + b2_ref[...])   # (A, 64)
    y = jnp.dot(h2, w3_ref[...], preferred_element_type=f32) + b3_ref[...]            # (A, S)

    # select each atom's own-species output, then reduce over atoms -> molecular energy
    onehot = (spec_col == lax.broadcasted_iota(jnp.int32, (A, S), 1).astype(f32)).astype(f32)
    e_atom = jnp.sum(onehot * y, axis=1, keepdims=True)                  # (A, 1)
    out_ref[0] = jnp.sum(e_atom, axis=0, keepdims=True)                  # (1, 1)


# ---------------------------------------------------------------------------
# Wrapper: one-time weight packing + single fused pallas_call over grid=(B,)
# ---------------------------------------------------------------------------
def pack_network_params(net_params):
    """Pack per-species MLP weights into block matrices (done once, on host)."""
    w1, b1, w2, b2, w3, b3 = [np.asarray(p, np.float32) for p in net_params]
    W1p = np.zeros((D, SH1), np.float32)        # (64, 128)
    w1s = np.zeros((1, SH1), np.float32)        # state row of layer 1
    W2p = np.zeros((SH1, SH2), np.float32)      # (128, 64) block-diagonal
    W3p = np.zeros((SH2, S), np.float32)        # (64, 4)
    for s in range(S):
        W1p[:, s * H1:(s + 1) * H1] = w1[s, :D, :]
        w1s[0, s * H1:(s + 1) * H1] = w1[s, D, :]
        W2p[s * H1:(s + 1) * H1, s * H2:(s + 1) * H2] = w2[s]
        W3p[s * H2:(s + 1) * H2, s] = w3[s, :, 0]
    b1p = b1.reshape(1, SH1)
    b2p = b2.reshape(1, SH2)
    b3p = b3.reshape(1, S)
    return tuple(jnp.asarray(x) for x in (W1p, b1p, w1s, W2p, b2p, W3p, b3p))


def state_input_net_forward(species, coordinates, state, packed_params):
    W1p, b1p, w1s, W2p, b2p, W3p, b3p = packed_params
    atoms = jnp.concatenate(
        [coordinates.reshape(B, A, 3),
         species.reshape(B, A, 1).astype(jnp.float32)], axis=2)          # (B, A, 4)
    atoms_t = jnp.transpose(atoms, (0, 2, 1))                            # (B, 4, A) (XLA, one-time)
    state_col = jnp.broadcast_to(state.reshape(B, 1, 1).astype(jnp.float32), (B, A, 1))

    mol_spec = lambda shape: pl.BlockSpec(shape, lambda b: (b, 0, 0))    # per-molecule blocks
    wt_spec = lambda shape: pl.BlockSpec(shape, lambda b: (0, 0))        # grid-invariant weights

    energies = pl.pallas_call(
        _state_net_kernel,
        out_shape=jax.ShapeDtypeStruct((B, 1, 1), jnp.float32),
        grid=(B,),
        in_specs=[
            mol_spec((1, A, 4)),        # atoms   (column form)
            mol_spec((1, 4, A)),        # atoms^T (row form)
            mol_spec((1, A, 1)),        # per-atom electronic-state column
            wt_spec((D, SH1)), wt_spec((1, SH1)), wt_spec((1, SH1)),
            wt_spec((SH1, SH2)), wt_spec((1, SH2)),
            wt_spec((SH2, S)), wt_spec((1, S)),
        ],
        out_specs=pl.BlockSpec((1, 1, 1), lambda b: (b, 0, 0)),
        compiler_params=pltpu.CompilerParams(dimension_semantics=("parallel",)),
        cost_estimate=pl.CostEstimate(flops=600_000, transcendentals=5_400,
                                      bytes_accessed=70_000),
    )(atoms, atoms_t, state_col, W1p, b1p, w1s, W2p, b2p, W3p, b3p)
    return species, energies[:, 0, 0]


# ---------------------------------------------------------------------------
# Independent float64 numpy reference (original per-species / per-molecule semantics)
# ---------------------------------------------------------------------------
def _celu_np(x):
    return np.where(x > 0, x, CELU_ALPHA * (np.exp(np.minimum(x, 0.0) / CELU_ALPHA) - 1.0))


def reference_forward(species, coordinates, state, net_params):
    w1, b1, w2, b2, w3, b3 = [np.asarray(p, np.float64) for p in net_params]
    species = np.asarray(species)
    coords = np.asarray(coordinates, np.float64)
    state = np.asarray(state, np.float64)
    shifts = SHIFT0 + SHIFT_STEP * np.arange(K, dtype=np.float64)

    energies = np.zeros(B, np.float64)
    for b in range(B):
        c, sp = coords[b], species[b]
        d = np.sqrt(((c[:, None, :] - c[None, :, :]) ** 2).sum(-1))        # (A, A)
        fc = np.where(d < RC, 0.5 * np.cos(np.pi * d / RC) + 0.5, 0.0)
        np.fill_diagonal(fc, 0.0)
        aev = np.zeros((A, D), np.float64)
        for s in range(S):
            mask = (sp == s).astype(np.float64)
            for k in range(K):
                g = 0.25 * np.exp(-ETA * (d - shifts[k]) ** 2) * fc
                aev[:, s * K + k] = g @ mask
        x = np.concatenate([aev, np.full((A, 1), state[b])], axis=1)       # (A, DIN)
        for i in range(A):
            s = int(sp[i])
            h = _celu_np(x[i] @ w1[s] + b1[s])
            h = _celu_np(h @ w2[s] + b2[s])
            energies[b] += h @ w3[s][:, 0] + b3[s, 0]
    return energies


if __name__ == "__main__":
    key = jax.random.PRNGKey(0)
    k_coord, k_species, k_state, *k_w = jax.random.split(key, 9)

    species = jax.random.randint(k_species, (B, A), 0, S, dtype=jnp.int32)
    coordinates = 1.5 * jax.random.normal(k_coord, (B, A, 3), jnp.float32)
    state = jax.random.normal(k_state, (B,), jnp.float32)

    w1 = 0.1 * jax.random.normal(k_w[0], (S, DIN, H1), jnp.float32)
    b1 = 0.1 * jax.random.normal(k_w[1], (S, H1), jnp.float32)
    w2 = 0.1 * jax.random.normal(k_w[2], (S, H1, H2), jnp.float32)
    b2 = 0.1 * jax.random.normal(k_w[3], (S, H2), jnp.float32)
    w3 = 0.1 * jax.random.normal(k_w[4], (S, H2, 1), jnp.float32)
    b3 = 0.1 * jax.random.normal(k_w[5], (S, 1), jnp.float32)
    net_params = (w1, b1, w2, b2, w3, b3)
    packed = pack_network_params(net_params)

    fwd = jax.jit(state_input_net_forward)
    species_out, energies = fwd(species, coordinates, state, packed)
    jax.block_until_ready(energies)

    e_ref = reference_forward(np.asarray(species), np.asarray(coordinates),
                              np.asarray(state), [np.asarray(p) for p in net_params])
    # AEV is exact f32 (XLU neighbour sum); only the MLP matmuls run at DEFAULT MXU precision,
    # so the tolerance covers bf16-pass drift against the float64 reference.
    np.testing.assert_allclose(np.asarray(energies), e_ref, rtol=2e-2, atol=2e-2)
    print("KERNEL_OK")
</pallas_src>

<mosaic_0001>
module attributes {stable_mosaic.version = 11 : i64} {
  func.func @_state_net_kernel(%arg0: i32, %arg1: memref<1x8x4xf32, #tpu.memory_space<vmem>>, %arg2: memref<1x4x8xf32, #tpu.memory_space<vmem>>, %arg3: memref<1x8x1xf32, #tpu.memory_space<vmem>>, %arg4: memref<64x128xf32, #tpu.memory_space<vmem>>, %arg5: memref<1x128xf32, #tpu.memory_space<vmem>>, %arg6: memref<1x128xf32, #tpu.memory_space<vmem>>, %arg7: memref<128x64xf32, #tpu.memory_space<vmem>>, %arg8: memref<1x64xf32, #tpu.memory_space<vmem>>, %arg9: memref<64x4xf32, #tpu.memory_space<vmem>>, %arg10: memref<1x4xf32, #tpu.memory_space<vmem>>, %arg11: memref<1x1x1xf32, #tpu.memory_space<vmem>>) attributes {dimension_semantics = [#tpu.dimension_semantics<parallel>], iteration_bounds = array<i64: 2>, scalar_prefetch = 0 : i64, scratch_operands = 0 : i64, tpu.core_type = #tpu.core_type<tc>, window_params = [{transform_indices = @transform_0, window_bounds = array<i64: 1, 8, 4>}, {transform_indices = @transform_1, window_bounds = array<i64: 1, 4, 8>}, {transform_indices = @transform_2, window_bounds = array<i64: 1, 8, 1>}, {pipeline_mode = #tpu.pipeline_mode<synchronous>, transform_indices = @transform_3, window_bounds = array<i64: 64, 128>}, {pipeline_mode = #tpu.pipeline_mode<synchronous>, transform_indices = @transform_4, window_bounds = array<i64: 1, 128>}, {pipeline_mode = #tpu.pipeline_mode<synchronous>, transform_indices = @transform_5, window_bounds = array<i64: 1, 128>}, {pipeline_mode = #tpu.pipeline_mode<synchronous>, transform_indices = @transform_6, window_bounds = array<i64: 128, 64>}, {pipeline_mode = #tpu.pipeline_mode<synchronous>, transform_indices = @transform_7, window_bounds = array<i64: 1, 64>}, {pipeline_mode = #tpu.pipeline_mode<synchronous>, transform_indices = @transform_8, window_bounds = array<i64: 64, 4>}, {pipeline_mode = #tpu.pipeline_mode<synchronous>, transform_indices = @transform_9, window_bounds = array<i64: 1, 4>}, {transform_indices = @transform_10, window_bounds = array<i64: 1, 1, 1>}]} {
    %c0 = arith.constant 0 : index
    %c0_0 = arith.constant 0 : index
    %c0_1 = arith.constant 0 : index
    %0 = vector.load %arg1[%c0, %c0_0, %c0_1] : memref<1x8x4xf32, #tpu.memory_space<vmem>>, vector<1x8x4xf32>
    %1 = vector.shape_cast %0 : vector<1x8x4xf32> to vector<8x4xf32>
    %c0_2 = arith.constant 0 : index
    %c0_3 = arith.constant 0 : index
    %c0_4 = arith.constant 0 : index
    %2 = vector.load %arg2[%c0_2, %c0_3, %c0_4] : memref<1x4x8xf32, #tpu.memory_space<vmem>>, vector<1x4x8xf32>
    %3 = vector.shape_cast %2 : vector<1x4x8xf32> to vector<4x8xf32>
    %4 = vector.extract_strided_slice %1 {offsets = [0, 3], sizes = [8, 1], strides = [1, 1]} : vector<8x4xf32> to vector<8x1xf32>
    %5 = vector.extract_strided_slice %3 {offsets = [3, 0], sizes = [1, 8], strides = [1, 1]} : vector<4x8xf32> to vector<1x8xf32>
    %6 = vector.extract_strided_slice %1 {offsets = [0, 0], sizes = [8, 1], strides = [1, 1]} : vector<8x4xf32> to vector<8x1xf32>
    %7 = vector.extract_strided_slice %3 {offsets = [0, 0], sizes = [1, 8], strides = [1, 1]} : vector<4x8xf32> to vector<1x8xf32>
    %8 = vector.broadcast %6 : vector<8x1xf32> to vector<8x8xf32>
    %9 = vector.broadcast %7 : vector<1x8xf32> to vector<8x8xf32>
    %10 = arith.subf %8, %9 : vector<8x8xf32>
    %11 = vector.extract_strided_slice %1 {offsets = [0, 1], sizes = [8, 1], strides = [1, 1]} : vector<8x4xf32> to vector<8x1xf32>
    %12 = vector.extract_strided_slice %3 {offsets = [1, 0], sizes = [1, 8], strides = [1, 1]} : vector<4x8xf32> to vector<1x8xf32>
    %13 = vector.broadcast %11 : vector<8x1xf32> to vector<8x8xf32>
    %14 = vector.broadcast %12 : vector<1x8xf32> to vector<8x8xf32>
    %15 = arith.subf %13, %14 : vector<8x8xf32>
    %16 = vector.extract_strided_slice %1 {offsets = [0, 2], sizes = [8, 1], strides = [1, 1]} : vector<8x4xf32> to vector<8x1xf32>
    %17 = vector.extract_strided_slice %3 {offsets = [2, 0], sizes = [1, 8], strides = [1, 1]} : vector<4x8xf32> to vector<1x8xf32>
    %18 = vector.broadcast %16 : vector<8x1xf32> to vector<8x8xf32>
    %19 = vector.broadcast %17 : vector<1x8xf32> to vector<8x8xf32>
    %20 = arith.subf %18, %19 : vector<8x8xf32>
    %21 = arith.mulf %10, %10 : vector<8x8xf32>
    %22 = arith.mulf %15, %15 : vector<8x8xf32>
    %23 = arith.addf %21, %22 : vector<8x8xf32>
    %24 = arith.mulf %20, %20 : vector<8x8xf32>
    %25 = arith.addf %23, %24 : vector<8x8xf32>
    %26 = math.sqrt %25 : vector<8x8xf32>
    %27 = tpu.iota {dimensions = array<i32: 0>} : vector<8x8xi32>
    %28 = tpu.iota {dimensions = array<i32: 1>} : vector<8x8xi32>
    %cst = arith.constant 5.200000e+00 : f32
    %29 = vector.broadcast %cst : f32 to vector<8x8xf32>
    %30 = arith.cmpf olt, %26, %29 : vector<8x8xf32>
    %cst_5 = arith.constant 3.14159274 : f32
    %31 = vector.broadcast %cst_5 : f32 to vector<8x8xf32>
    %32 = arith.mulf %31, %26 : vector<8x8xf32>
    %cst_6 = arith.constant 5.200000e+00 : f32
    %33 = vector.broadcast %cst_6 : f32 to vector<8x8xf32>
    %34 = arith.divf %32, %33 : vector<8x8xf32>
    %35 = math.cos %34 : vector<8x8xf32>
    %cst_7 = arith.constant 5.000000e-01 : f32
    %36 = vector.broadcast %cst_7 : f32 to vector<8x8xf32>
    %37 = arith.mulf %36, %35 : vector<8x8xf32>
    %cst_8 = arith.constant 5.000000e-01 : f32
    %38 = vector.broadcast %cst_8 : f32 to vector<8x8xf32>
    %39 = arith.addf %37, %38 : vector<8x8xf32>
    %cst_9 = arith.constant 0.000000e+00 : f32
    %40 = vector.broadcast %cst_9 : f32 to vector<8x8xf32>
    %41 = arith.select %30, %39, %40 : vector<8x8xi1>, vector<8x8xf32>
    %42 = arith.cmpi ne, %27, %28 : vector<8x8xi32>
    %cst_10 = arith.constant 0.000000e+00 : f32
    %43 = vector.broadcast %cst_10 : f32 to vector<8x8xf32>
    %44 = arith.select %42, %41, %43 : vector<8x8xi1>, vector<8x8xf32>
    %45 = tpu.iota {dimensions = array<i32: 2>} : vector<8x8x16xi32>
    %46 = arith.sitofp %45 : vector<8x8x16xi32> to vector<8x8x16xf32>
    %cst_11 = arith.constant 0.266666681 : f32
    %47 = vector.broadcast %cst_11 : f32 to vector<8x8x16xf32>
    %48 = arith.mulf %47, %46 : vector<8x8x16xf32>
    %cst_12 = arith.constant 0.899999976 : f32
    %49 = vector.broadcast %cst_12 : f32 to vector<8x8x16xf32>
    %50 = arith.addf %49, %48 : vector<8x8x16xf32>
    %cst_13 = arith.constant 2.500000e-01 : f32
    %51 = vector.broadcast %cst_13 : f32 to vector<8x8xf32>
    %52 = arith.mulf %51, %44 : vector<8x8xf32>
    %53 = vector.shape_cast %52 : vector<8x8xf32> to vector<8x8x1xf32>
    %54 = vector.shape_cast %26 : vector<8x8xf32> to vector<8x8x1xf32>
    %55 = vector.broadcast %54 : vector<8x8x1xf32> to vector<8x8x16xf32>
    %56 = arith.subf %55, %50 : vector<8x8x16xf32>
    %57 = arith.mulf %56, %56 : vector<8x8x16xf32>
    %cst_14 = arith.constant -1.600000e+01 : f32
    %58 = vector.broadcast %cst_14 : f32 to vector<8x8x16xf32>
    %59 = arith.mulf %58, %57 : vector<8x8x16xf32>
    %60 = math.exp %59 : vector<8x8x16xf32>
    %61 = vector.broadcast %53 : vector<8x8x1xf32> to vector<8x8x16xf32>
    %62 = arith.mulf %61, %60 : vector<8x8x16xf32>
    %cst_15 = arith.constant 0.000000e+00 : f32
    %63 = vector.broadcast %cst_15 : f32 to vector<1x8xf32>
    %64 = arith.cmpf oeq, %5, %63 : vector<1x8xf32>
    %65 = arith.extui %64 : vector<1x8xi1> to vector<1x8xi32>
    %66 = arith.sitofp %65 : vector<1x8xi32> to vector<1x8xf32>
    %67 = vector.shape_cast %66 : vector<1x8xf32> to vector<1x8x1xf32>
    %68 = vector.broadcast %67 : vector<1x8x1xf32> to vector<8x8x16xf32>
    %69 = arith.mulf %62, %68 : vector<8x8x16xf32>
    %cst_16 = arith.constant dense<0.000000e+00> : vector<8x16xf32>
    %70 = vector.multi_reduction <add>, %69, %cst_16 [1] : vector<8x8x16xf32> to vector<8x16xf32>
    %cst_17 = arith.constant 1.000000e+00 : f32
    %71 = vector.broadcast %cst_17 : f32 to vector<1x8xf32>
    %72 = arith.cmpf oeq, %5, %71 : vector<1x8xf32>
    %73 = arith.extui %72 : vector<1x8xi1> to vector<1x8xi32>
    %74 = arith.sitofp %73 : vector<1x8xi32> to vector<1x8xf32>
    %75 = vector.shape_cast %74 : vector<1x8xf32> to vector<1x8x1xf32>
    %76 = vector.broadcast %75 : vector<1x8x1xf32> to vector<8x8x16xf32>
    %77 = arith.mulf %62, %76 : vector<8x8x16xf32>
    %cst_18 = arith.constant dense<0.000000e+00> : vector<8x16xf32>
    %78 = vector.multi_reduction <add>, %77, %cst_18 [1] : vector<8x8x16xf32> to vector<8x16xf32>
    %cst_19 = arith.constant 2.000000e+00 : f32
    %79 = vector.broadcast %cst_19 : f32 to vector<1x8xf32>
    %80 = arith.cmpf oeq, %5, %79 : vector<1x8xf32>
    %81 = arith.extui %80 : vector<1x8xi1> to vector<1x8xi32>
    %82 = arith.sitofp %81 : vector<1x8xi32> to vector<1x8xf32>
    %83 = vector.shape_cast %82 : vector<1x8xf32> to vector<1x8x1xf32>
    %84 = vector.broadcast %83 : vector<1x8x1xf32> to vector<8x8x16xf32>
    %85 = arith.mulf %62, %84 : vector<8x8x16xf32>
    %cst_20 = arith.constant dense<0.000000e+00> : vector<8x16xf32>
    %86 = vector.multi_reduction <add>, %85, %cst_20 [1] : vector<8x8x16xf32> to vector<8x16xf32>
    %cst_21 = arith.constant 3.000000e+00 : f32
    %87 = vector.broadcast %cst_21 : f32 to vector<1x8xf32>
    %88 = arith.cmpf oeq, %5, %87 : vector<1x8xf32>
    %89 = arith.extui %88 : vector<1x8xi1> to vector<1x8xi32>
    %90 = arith.sitofp %89 : vector<1x8xi32> to vector<1x8xf32>
    %91 = vector.shape_cast %90 : vector<1x8xf32> to vector<1x8x1xf32>
    %92 = vector.broadcast %91 : vector<1x8x1xf32> to vector<8x8x16xf32>
    %93 = arith.mulf %62, %92 : vector<8x8x16xf32>
    %cst_22 = arith.constant dense<0.000000e+00> : vector<8x16xf32>
    %94 = vector.multi_reduction <add>, %93, %cst_22 [1] : vector<8x8x16xf32> to vector<8x16xf32>
    %95 = tpu.concatenate %70, %78, %86, %94 in 1 : vector<8x16xf32>, vector<8x16xf32>, vector<8x16xf32>, vector<8x16xf32> -> vector<8x64xf32>
    %c0_23 = arith.constant 0 : index
    %c0_24 = arith.constant 0 : index
    %c0_25 = arith.constant 0 : index
    %96 = vector.load %arg3[%c0_23, %c0_24, %c0_25] : memref<1x8x1xf32, #tpu.memory_space<vmem>>, vector<1x8x1xf32>
    %97 = vector.shape_cast %96 : vector<1x8x1xf32> to vector<8x1xf32>
    %c0_26 = arith.constant 0 : index
    %c0_27 = arith.constant 0 : index
    %98 = vector.load %arg4[%c0_26, %c0_27] : memref<64x128xf32, #tpu.memory_space<vmem>>, vector<64x128xf32>
    %cst_28 = arith.constant dense<0.000000e+00> : vector<8x128xf32>
    %99 = tpu.matmul %95, %98, %cst_28 {dimension_numbers = #tpu.dot_dimension_numbers<[1], [0], [0], [1], [0, 0, 1, 1], [], []>} : vector<8x64xf32>, vector<64x128xf32>, vector<8x128xf32> -> vector<8x128xf32>
    %c0_29 = arith.constant 0 : index
    %c0_30 = arith.constant 0 : index
    %100 = vector.load %arg5[%c0_29, %c0_30] : memref<1x128xf32, #tpu.memory_space<vmem>>, vector<1x128xf32>
    %101 = vector.broadcast %100 : vector<1x128xf32> to vector<8x128xf32>
    %102 = arith.addf %99, %101 : vector<8x128xf32>
    %c0_31 = arith.constant 0 : index
    %c0_32 = arith.constant 0 : index
    %103 = vector.load %arg6[%c0_31, %c0_32] : memref<1x128xf32, #tpu.memory_space<vmem>>, vector<1x128xf32>
    %104 = vector.broadcast %97 : vector<8x1xf32> to vector<8x128xf32>
    %105 = vector.broadcast %103 : vector<1x128xf32> to vector<8x128xf32>
    %106 = arith.mulf %104, %105 : vector<8x128xf32>
    %107 = arith.addf %102, %106 : vector<8x128xf32>
    %cst_33 = arith.constant 0.000000e+00 : f32
    %108 = vector.broadcast %cst_33 : f32 to vector<8x128xf32>
    %109 = arith.cmpf ogt, %107, %108 : vector<8x128xf32>
    %cst_34 = arith.constant 0.000000e+00 : f32
    %110 = vector.broadcast %cst_34 : f32 to vector<8x128xf32>
    %111 = arith.minimumf %107, %110 : vector<8x128xf32>
    %cst_35 = arith.constant 1.000000e-01 : f32
    %112 = vector.broadcast %cst_35 : f32 to vector<8x128xf32>
    %113 = arith.divf %111, %112 : vector<8x128xf32>
    %114 = math.exp %113 : vector<8x128xf32>
    %cst_36 = arith.constant 1.000000e+00 : f32
    %115 = vector.broadcast %cst_36 : f32 to vector<8x128xf32>
    %116 = arith.subf %114, %115 : vector<8x128xf32>
    %cst_37 = arith.constant 1.000000e-01 : f32
    %117 = vector.broadcast %cst_37 : f32 to vector<8x128xf32>
    %118 = arith.mulf %117, %116 : vector<8x128xf32>
    %119 = arith.select %109, %107, %118 : vector<8x128xi1>, vector<8x128xf32>
    %c0_38 = arith.constant 0 : index
    %c0_39 = arith.constant 0 : index
    %120 = vector.load %arg7[%c0_38, %c0_39] : memref<128x64xf32, #tpu.memory_space<vmem>>, vector<128x64xf32>
    %cst_40 = arith.constant dense<0.000000e+00> : vector<8x64xf32>
    %121 = tpu.matmul %119, %120, %cst_40 {dimension_numbers = #tpu.dot_dimension_numbers<[1], [0], [0], [1], [0, 0, 1, 1], [], []>} : vector<8x128xf32>, vector<128x64xf32>, vector<8x64xf32> -> vector<8x64xf32>
    %c0_41 = arith.constant 0 : index
    %c0_42 = arith.constant 0 : index
    %122 = vector.load %arg8[%c0_41, %c0_42] : memref<1x64xf32, #tpu.memory_space<vmem>>, vector<1x64xf32>
    %123 = vector.broadcast %122 : vector<1x64xf32> to vector<8x64xf32>
    %124 = arith.addf %121, %123 : vector<8x64xf32>
    %cst_43 = arith.constant 0.000000e+00 : f32
    %125 = vector.broadcast %cst_43 : f32 to vector<8x64xf32>
    %126 = arith.cmpf ogt, %124, %125 : vector<8x64xf32>
    %cst_44 = arith.constant 0.000000e+00 : f32
    %127 = vector.broadcast %cst_44 : f32 to vector<8x64xf32>
    %128 = arith.minimumf %124, %127 : vector<8x64xf32>
    %cst_45 = arith.constant 1.000000e-01 : f32
    %129 = vector.broadcast %cst_45 : f32 to vector<8x64xf32>
    %130 = arith.divf %128, %129 : vector<8x64xf32>
    %131 = math.exp %130 : vector<8x64xf32>
    %cst_46 = arith.constant 1.000000e+00 : f32
    %132 = vector.broadcast %cst_46 : f32 to vector<8x64xf32>
    %133 = arith.subf %131, %132 : vector<8x64xf32>
    %cst_47 = arith.constant 1.000000e-01 : f32
    %134 = vector.broadcast %cst_47 : f32 to vector<8x64xf32>
    %135 = arith.mulf %134, %133 : vector<8x64xf32>
    %136 = arith.select %126, %124, %135 : vector<8x64xi1>, vector<8x64xf32>
    %c0_48 = arith.constant 0 : index
    %c0_49 = arith.constant 0 : index
    %137 = vector.load %arg9[%c0_48, %c0_49] : memref<64x4xf32, #tpu.memory_space<vmem>>, vector<64x4xf32>
    %cst_50 = arith.constant dense<0.000000e+00> : vector<8x4xf32>
    %138 = tpu.matmul %136, %137, %cst_50 {dimension_numbers = #tpu.dot_dimension_numbers<[1], [0], [0], [1], [0, 0, 1, 1], [], []>} : vector<8x64xf32>, vector<64x4xf32>, vector<8x4xf32> -> vector<8x4xf32>
    %c0_51 = arith.constant 0 : index
    %c0_52 = arith.constant 0 : index
    %139 = vector.load %arg10[%c0_51, %c0_52] : memref<1x4xf32, #tpu.memory_space<vmem>>, vector<1x4xf32>
    %140 = vector.broadcast %139 : vector<1x4xf32> to vector<8x4xf32>
    %141 = arith.addf %138, %140 : vector<8x4xf32>
    %142 = tpu.iota {dimensions = array<i32: 1>} : vector<8x4xi32>
    %143 = arith.sitofp %142 : vector<8x4xi32> to vector<8x4xf32>
    %144 = vector.broadcast %4 : vector<8x1xf32> to vector<8x4xf32>
    %145 = arith.cmpf oeq, %144, %143 : vector<8x4xf32>
    %146 = arith.extui %145 : vector<8x4xi1> to vector<8x4xi32>
    %147 = arith.sitofp %146 : vector<8x4xi32> to vector<8x4xf32>
    %148 = arith.mulf %147, %141 : vector<8x4xf32>
    %cst_53 = arith.constant dense<0.000000e+00> : vector<8xf32>
    %149 = vector.multi_reduction <add>, %148, %cst_53 [1] : vector<8x4xf32> to vector<8xf32>
    %150 = vector.shape_cast %149 : vector<8xf32> to vector<8x1xf32>
    %cst_54 = arith.constant dense<0.000000e+00> : vector<1xf32>
    %151 = vector.multi_reduction <add>, %150, %cst_54 [0] : vector<8x1xf32> to vector<1xf32>
    %152 = vector.shape_cast %151 : vector<1xf32> to vector<1x1xf32>
    %c0_55 = arith.constant 0 : index
    %c0_56 = arith.constant 0 : index
    %c0_57 = arith.constant 0 : index
    %153 = vector.load %arg11[%c0_55, %c0_56, %c0_57] : memref<1x1x1xf32, #tpu.memory_space<vmem>>, vector<1x1x1xf32>
    %154 = vector.shape_cast %153 : vector<1x1x1xf32> to vector<1x1xf32>
    %155 = vector.shape_cast %152 : vector<1x1xf32> to vector<1x1x1xf32>
    tpu.vector_store %arg11[%c0_55, %c0_56, %c0_57], %155 {strides = array<i32>} : memref<1x1x1xf32, #tpu.memory_space<vmem>>, vector<1x1x1xf32>,
    return
  }
  func.func @transform_0(%arg0: i32) -> (i32, i32, i32) {
    %c0_i32 = arith.constant 0 : i32
    %c0_i32_0 = arith.constant 0 : i32
    %c0_i32_1 = arith.constant 0 : i32
    return %arg0, %c0_i32, %c0_i32_0 : i32, i32, i32
  }
  func.func @transform_1(%arg0: i32) -> (i32, i32, i32) {
    %c0_i32 = arith.constant 0 : i32
    %c0_i32_0 = arith.constant 0 : i32
    %c0_i32_1 = arith.constant 0 : i32
    return %arg0, %c0_i32, %c0_i32_0 : i32, i32, i32
  }
  func.func @transform_2(%arg0: i32) -> (i32, i32, i32) {
    %c0_i32 = arith.constant 0 : i32
    %c0_i32_0 = arith.constant 0 : i32
    %c0_i32_1 = arith.constant 0 : i32
    return %arg0, %c0_i32, %c0_i32_0 : i32, i32, i32
  }
  func.func @transform_3(%arg0: i32) -> (i32, i32) {
    %c0_i32 = arith.constant 0 : i32
    %c0_i32_0 = arith.constant 0 : i32
    %c0_i32_1 = arith.constant 0 : i32
    return %c0_i32, %c0_i32_0 : i32, i32
  }
  func.func @transform_4(%arg0: i32) -> (i32, i32) {
    %c0_i32 = arith.constant 0 : i32
    %c0_i32_0 = arith.constant 0 : i32
    %c0_i32_1 = arith.constant 0 : i32
    return %c0_i32, %c0_i32_0 : i32, i32
  }
  func.func @transform_5(%arg0: i32) -> (i32, i32) {
    %c0_i32 = arith.constant 0 : i32
    %c0_i32_0 = arith.constant 0 : i32
    %c0_i32_1 = arith.constant 0 : i32
    return %c0_i32, %c0_i32_0 : i32, i32
  }
  func.func @transform_6(%arg0: i32) -> (i32, i32) {
    %c0_i32 = arith.constant 0 : i32
    %c0_i32_0 = arith.constant 0 : i32
    %c0_i32_1 = arith.constant 0 : i32
    return %c0_i32, %c0_i32_0 : i32, i32
  }
  func.func @transform_7(%arg0: i32) -> (i32, i32) {
    %c0_i32 = arith.constant 0 : i32
    %c0_i32_0 = arith.constant 0 : i32
    %c0_i32_1 = arith.constant 0 : i32
    return %c0_i32, %c0_i32_0 : i32, i32
  }
  func.func @transform_8(%arg0: i32) -> (i32, i32) {
    %c0_i32 = arith.constant 0 : i32
    %c0_i32_0 = arith.constant 0 : i32
    %c0_i32_1 = arith.constant 0 : i32
    return %c0_i32, %c0_i32_0 : i32, i32
  }
  func.func @transform_9(%arg0: i32) -> (i32, i32) {
    %c0_i32 = arith.constant 0 : i32
    %c0_i32_0 = arith.constant 0 : i32
    %c0_i32_1 = arith.constant 0 : i32
    return %c0_i32, %c0_i32_0 : i32, i32
  }
  func.func @transform_10(%arg0: i32) -> (i32, i32, i32) {
    %c0_i32 = arith.constant 0 : i32
    %c0_i32_0 = arith.constant 0 : i32
    %c0_i32_1 = arith.constant 0 : i32
    return %arg0, %c0_i32, %c0_i32_0 : i32, i32, i32
  }
}

</mosaic_0001>

<bundles_post_ra>
// kernel: state_input_net_forward.1
= control target key start
LH: loop header
LB: loop body
LE: loop exit
PB: predicated region body
PF: predicated region fallthrough
CT: control target
= control target key end

     0   :  { %s1753_s13 = smov 0   ;;  %s2298_s0 = inlined_call_operand.vmem [shape: f32[2,8,4], index: 0, kind: input, shape index: {}]   ;;  %s2299_s1 = inlined_call_operand.vmem [shape: f32[2,4,8], index: 1, kind: input, shape index: {}]   ;;  %s2300_s2 = inlined_call_operand.vmem [shape: f32[2,8,1], index: 2, kind: input, shape index: {}]   ;;  %s2301_s3 = inlined_call_operand.vmem [shape: f32[64,128], index: 3, kind: input, shape index: {}]   ;;  %s2302_s4 = inlined_call_operand.vmem [shape: f32[1,128], index: 4, kind: input, shape index: {}]   ;;  %s2303_s5 = inlined_call_operand.vmem [shape: f32[1,128], index: 5, kind: input, shape index: {}]   ;;  %s2304_s6 = inlined_call_operand.vmem [shape: f32[128,64], index: 6, kind: input, shape index: {}]   ;;  %s2305_s7 = inlined_call_operand.vmem [shape: f32[1,64], index: 7, kind: input, shape index: {}]   ;;  %s2306_s8 = inlined_call_operand.vmem [shape: f32[64,4], index: 8, kind: input, shape index: {}]   ;;  %s2307_s9 = inlined_call_operand.vmem [shape: f32[1,4], index: 9, kind: input, shape index: {}]   ;;  %s2308_s10 = inlined_call_operand.vmem [shape: f32[2,1,1], index: 10, kind: output, shape index: {}]  }
   0x1 LB: > { %s1481_s14 = sadd.s32 4294967295, %s1681_s13   ;;  %p1485_p0 = scmp.ge.s32.totalorder %s1681_s13, 1  ;;  %s1681_s13 = sphi %s1753_s13, %s20_s13  }
   0x2   : > { %p329_p1 = scmp.lt.s32.totalorder %s1681_s13, 3 }
   0x4   : > { %p330_p2 = pnand %p1485_p0, %p329_p1 }
   0x5   : > { %p372_p3 = scmp.lt.s32.totalorder (!%p330_p2), %s1481_s14, 1  ;;  %s1693_s21 = smov (!%p330_p2), 32  }
   0x6   : > { %333 = sbr.rel (%p330_p2) target bundleno = 1360 (0x550), region = 60 }
   0xb   : > { %v1683_v0 = vmov 0   ;;  %v1684_v1 = vmov 2   ;;  %s2310_s14 = smov (!%p372_p3, %s1481_s14), 1  ;;  %v1685_v3 = vmov 1   ;;  %v1686_v4 = vmov 0.0  }
   0xc   : > { %1643 = vset.pattern.permute.xlu0 %v1683_v0  ;;  %1645 = vset.pattern.permute.xlu1 %v1684_v1  ;;  %s1486_s15 = sshll.u32 %s2310_s14, 3  ;;  %v394_v5 = vlaneseq  ;;  %s1487_s19 = sshll.u32 %s2310_s14, 2  ;;  %v1687_v59 = vmov 683565275   ;;  %v1688_v61 = vmov 2475754826  }
   0xd   : > { %s1769_s18 = scalar_lea.vmem %s2298_s0, %s1486_s15  ;;  %1543 = vmatprep.subr.mxu0 %v1686_v4  ;;  %1562 = vmatprep.subr.mxu1 %v1686_v4  ;;  %s379_s22 = scalar_lea.vmem %s2299_s1, %s1487_s19  ;;  %v1689_v63 = vmov 2131351028  }
   0xe   : > { %v387_v2 = vld [vmem:[%s1769_s18] sm:$0xff]  ;;  %v1776_v6 = vshrl.u32 %v394_v5, 7  ;;  %s383_s27 = scalar_lea.vmem %s2300_s2, %s1486_s15  ;;  %s1695_s15 = smov 48  }
   0xf   : > { %391 = vperm.xlu0 %1643, %v387_v2   ;;  %409 = vperm.xlu1 %1645, %v387_v2   ;;  %v1787_v9 = vld [vmem:[%s379_s22] sm:$0xf]  ;;  %s1694_s22 = smov 16   ;;  %s386_s17 = scalar_lea.vmem %s2308_s10, %s2310_s14 }
  0x10   : > { %v1782_v7 = vsub.s32 0, %v1776_v6  ;;  %v1785_v8 = vsub.s32 2, %v1776_v6  ;;  %v1790_v10 = vsub.s32 1, %v1776_v6  ;;  %v579_v33 = vsub.s32 4, %v1776_v6 }
  0x11   : > { %v593_v35 = vsub.s32 6, %v1776_v6  ;;  %v1810_v36 = vsub.s32 3, %v1776_v6  ;;  %vm784_vm2 = vcmp.eq.f32.partialorder %v1787_v9, 1.0  ;;  %v586_v41 = vsub.s32 5, %v1776_v6 }
  0x12   : > { %v397_v11 = vrot.slane %v1787_v9, %v1782_v7  ;;  %v415_v13 = vrot.slane %v1787_v9, %v1785_v8  ;;  %v406_v15 = vrot.slane %v1787_v9, %v1790_v10  ;;  %v1494_v42 = vsel %vm784_vm2, 1.0, %v1686_v4 }
  0x13   : > { %1644 = vset.pattern.permute.xlu0 %v1685_v3  ;;  %1646 = vset.pattern.permute.xlu1 %v1683_v0  ;;  %vm858_vm3 = vcmp.eq.f32.partialorder %v1787_v9, 2.0  ;;  %v790_v47 = vrot.slane %v1494_v42, %v1810_v36  ;;  %v600_v50 = vsub.s32 7, %v1776_v6  ;;  %v1690_v3 = vmov 2102212464  }
  0x14   : > { %400 = vperm.xlu0 %1644, %v387_v2   ;;  %v1495_v48 = vsel %vm858_vm3, 1.0, %v1686_v4  ;;  %vm932_vm3 = vcmp.eq.f32.partialorder %v1787_v9, 3.0 }
  0x15   : > { %v864_v54 = vrot.slane %v1495_v48, %v1810_v36 }
  0x8a   : > { %v392_v12 = vpop.permute.xlu0 %391  ;;  %v410_v14 = vpop.permute.xlu1 %409 }
  0x8b   : > { %v398_v16 = vsub.f32 %v392_v12, %v397_v11  ;;  %v416_v17 = vsub.f32 %v410_v14, %v415_v13  ;;  %v1691_v13 = vmov 920167782  }
  0x8d   : > { %v417_v20 = vmul.f32 %v398_v16, %v398_v16  ;;  %v420_v22 = vmul.f32 %v416_v17, %v416_v17  ;;  %v1692_v16 = vmov 1326507024  }
  0x8f   : > { %v401_v18 = vpop.permute.xlu0 %400 }
  0x90   : > { %v407_v19 = vsub.f32 %v401_v18, %v406_v15 }
  0x92   : > { %v418_v21 = vmul.f32 %v407_v19, %v407_v19 }
  0x94   : > { %v419_v23 = vadd.f32 %v418_v21, %v417_v20 }
  0x96   : > { %v421_v24 = vadd.f32 %v420_v22, %v419_v23 }
  0x98   : > { %1648 = vrsqrt.f32 %v421_v24  ;;  %vm424_vm0 = vcmp.eq.f32.partialorder %v421_v24, inf  ;;  %v427_v27 = vand.u32 2147483648, %v421_v24  ;;  %vm426_vm1 = vcmp.eq.f32.partialorder %v421_v24, 0.0 }
  0xa5   : > { %v1649_v25 = vpop.eup %1648 }
  0xa6   : > { %v423_v26 = vmul.f32 %v1649_v25, %v421_v24 }
  0xa8   : > { %v425_v28 = vsel %vm424_vm0, %v421_v24, %v423_v26 }
  0xa9   : > { %v1798_v29 = vsel %vm426_vm1, %v427_v27, %v425_v28 }
  0xaa   : > { %v434_v30 = vmul.f32 3.1415927, %v1798_v29  ;;  %v622_v31 = vrot.slane %v1798_v29, %v1785_v8  ;;  %v608_v32 = vrot.slane %v1798_v29, %v1782_v7  ;;  %v636_v38 = vrot.slane %v1798_v29, %v579_v33 }
  0xab   : > { %v615_v39 = vrot.slane %v1798_v29, %v1790_v10  ;;  %v650_v44 = vrot.slane %v1798_v29, %v593_v35  ;;  %v629_v45 = vrot.slane %v1798_v29, %v1810_v36  ;;  %v643_v49 = vrot.slane %v1798_v29, %v586_v41 }
  0xac   : > { %v1806_v34 = vmul.f32 0.1923077, %v434_v30  ;;  %624 = vbcast.lane.b32.xlu0 %v622_v31, 256  ;;  %610 = vbcast.lane.b32.xlu1 %v608_v32, 256  ;;  %v657_v55 = vrot.slane %v1798_v29, %v600_v50  ;;  %vm433_vm2 = vcmp.lt.f32.partialorder %v1798_v29, 5.2 }
  0xae   : > { %v440_v37 = vand.u32 2139095040, %v1806_v34  ;;  %v437_v51 = vand.u32 2147483647, %v1806_v34  ;;  %vm439_vm11 = vcmp.lt.s32.totalorder %v1806_v34, 0  ;;  %vm529_vm0 = vweird.f32 %v1806_v34 }
  0xb0   : > { %v441_v40 = vshrl.u32 %v440_v37, 23  ;;  %638 = vbcast.lane.b32.xlu0 %v636_v38, 256  ;;  %617 = vbcast.lane.b32.xlu1 %v615_v39, 256  ;;  %v444_v56 = vand.u32 8388607, %v437_v51 }
  0xb1   : > { %vm438_vm12 = vcmp.le.f32.partialorder %v437_v51, 0.7853982  ;;  %v1855_v51 = vand.u32 127, %v394_v5  ;;  %v1496_v5 = vsel %vm932_vm3, 1.0, %v1686_v4 }
  0xb2   : > { %v1489_v43 = vadd.s32 4294967169, %v441_v40  ;;  %v445_v18 = vor.u32 8388608, %v444_v56  ;;  %v938_v29 = vrot.slane %v1496_v5, %v1810_v36 }
  0xb3   : > { %vm543_vm1 = vcmp.ne.s32.totalorder %v1776_v6, %v1855_v51  ;;  %v1094_v6 = vld [vmem:[%s2301_s3 + $0x28] sm:$0xff] }
  0xb4   : > { %v447_v46 = vadd.s32 1, %v1489_v43  ;;  %652 = vbcast.lane.b32.xlu0 %v650_v44, 256  ;;  %631 = vbcast.lane.b32.xlu1 %v629_v45, 256  ;;  %v485_v37 = vshll.u32 %v445_v18, 8 }
  0xb6   : > { %vm448_vm4 = vcmp.gt.s32.totalorder %v447_v46, 0 }
  0xb7   : > { %v449_v52 = vsel %vm448_vm4, %v447_v46, 0  ;;  %vm709_vm4 = vcmp.eq.f32.partialorder %v1787_v9, 0.0  ;;  %v1093_v9 = vld [vmem:[%s2301_s3 + $0x20] sm:$0xff] }
  0xb8   : > { %v451_v53 = vand.u32 31, %v449_v52  ;;  %645 = vbcast.lane.b32.xlu1 %v643_v49, 256  ;;  %792 = vbcast.lane.b32.xlu0 %v790_v47, 256  ;;  %v450_v58 = vshrl.u32 %v449_v52, 5 }
  0xba   : > { %v452_v57 = vsub.s32 32, %v451_v53  ;;  %v454_v60 = vshll.u32 %v1687_v59, %v451_v53  ;;  %v457_v62 = vshll.u32 %v1688_v61, %v451_v53  ;;  %v460_v0 = vshll.u32 %v1689_v63, %v451_v53 }
  0xbb   : > { %v463_v11 = vshll.u32 %v1690_v3, %v451_v53  ;;  %v466_v15 = vshll.u32 %v1691_v13, %v451_v53  ;;  %vm469_vm5 = vcmp.lt.s32.totalorder %v450_v58, 1  ;;  %vm471_vm6 = vcmp.lt.s32.totalorder %v450_v58, 3 }
  0xbc   : > { %659 = vbcast.lane.b32.xlu1 %v657_v55, 256  ;;  %866 = vbcast.lane.b32.xlu0 %v864_v54, 256  ;;  %v455_v1 = vshrl.u32 %v1688_v61, %v452_v57  ;;  %v458_v2 = vshrl.u32 %v1689_v63, %v452_v57  ;;  %v461_v12 = vshrl.u32 %v1690_v3, %v452_v57  ;;  %vm472_vm7 = vcmp.lt.s32.totalorder %v450_v58, 4 }
  0xbd   : > { %v464_v14 = vshrl.u32 %v1691_v13, %v452_v57  ;;  %v467_v17 = vshrl.u32 %v1692_v16, %v452_v57  ;;  %v453_v24 = vshrl.u32 %v1687_v59, %v452_v57  ;;  %vm470_vm8 = vcmp.lt.s32.totalorder %v450_v58, 2 }
  0xbe   : > { %v456_v19 = vor.u32 %v455_v1, %v454_v60  ;;  %v459_v20 = vor.u32 %v458_v2, %v457_v62  ;;  %v462_v21 = vor.u32 %v461_v12, %v460_v0 }
  0xbf   : > { %v465_v22 = vor.u32 %v464_v14, %v463_v11  ;;  %v468_v23 = vor.u32 %v467_v17, %v466_v15 }
  0xc0   : > { %v477_v25 = vsel %vm469_vm5, %v456_v19, %v459_v20  ;;  %v474_v26 = vsel %vm472_vm7, %v462_v21, 2102212464  ;;  %v481_v28 = vsel %vm469_vm5, %v459_v20, %v462_v21  ;;  %v473_v38 = vsel %vm469_vm5, %v453_v24, %v456_v19 }
  0xc1   : > { %v478_v27 = vsel %vm472_vm7, %v465_v22, 920167782  ;;  %v482_v30 = vsel %vm472_vm7, %v468_v23, 1326507024  ;;  %v475_v39 = vsel %vm471_vm6, %v459_v20, %v474_v26  ;;  %vm727_vm5 = vcmask 130048  }
  0xc2   : > { %v479_v31 = vsel %vm471_vm6, %v462_v21, %v478_v27  ;;  %v483_v32 = vsel %vm471_vm6, %v465_v22, %v482_v30  ;;  %v476_v47 = vsel %vm470_vm8, %v473_v38, %v475_v39  ;;  %vm1014_vm6 = vcmask 1041409  }
  0xc3   : > { %v480_v40 = vsel %vm470_vm8, %v477_v25, %v479_v31  ;;  %v484_v42 = vsel %vm470_vm8, %v481_v28, %v483_v32  ;;  %v492_v49 = vmul.u32 %v485_v37, %v476_v47  ;;  %vm1016_vm7 = vcmask 1042434  }
  0xc4   : > { %v1840_v43 = vmul.u32.u64.low %v485_v37, %v484_v42  ;;  %v1841_v44 = vmul.u32.u64.high %v485_v37, %v484_v42, %v1840_v43  ;;  %v1843_v45 = vmul.u32.u64.low %v485_v37, %v480_v40  ;;  %v1844_v46 = vmul.u32.u64.high %v485_v37, %v480_v40, %v1843_v45 }
  0xc5   : > { %vm1018_vm8 = vcmask 1043459  }
  0xc6   : > { %vm494_vm9 = vc.u32 %v1841_v44, %v1843_v45  ;;  %v495_v48 = vadd.s32 1, %v1844_v46  ;;  %v493_v63 = vadd.s32 %v1843_v45, %v1841_v44 }
  0xc8   : > { %v496_v52 = vsel %vm494_vm9, %v495_v48, %v1844_v46  ;;  %vm1020_vm9 = vcmask 1044484  }
  0xc9   : > { %v497_v53 = vadd.s32 %v496_v52, %v492_v49 }
  0xcb   : > { %v498_v54 = vadd.s32 536870912, %v497_v53 }
  0xcd   : > { %v499_v55 = vshrl.u32 %v498_v54, 30 }
  0xcf   : > { %v500_v56 = vshll.u32 %v499_v55, 30  ;;  %v523_v21 = vsub.s32 4, %v499_v55 }
  0xd1   : > { %v501_v57 = vsub.s32 %v497_v53, %v500_v56  ;;  %v524_v22 = vsel %vm439_vm11, %v523_v21, %v499_v55 }
  0xd2   : > { %v526_v23 = vsel %vm438_vm12, 0, %v524_v22 }
  0xd3   : > { %v503_v58 = vsub.s32 0, %v501_v57  ;;  %v530_v24 = vand.u32 3, %v526_v23 }
  0xd5   : > { %v1490_v59 = vmin.u32 %v503_v58, %v501_v57  ;;  %vm535_vm13 = vcmp.eq.s32.totalorder %v530_v24, 2  ;;  %vm532_vm14 = vcmp.eq.s32.totalorder %v530_v24, 0  ;;  %vm531_vm15 = vcmp.lt.s32.totalorder %v530_v24, 2 }
  0xd7   : > { %v505_v60 = vclz %v1490_v59 }
  0xd9   : > { %v1491_v61 = vadd.s32 4294967294, %v505_v60 }
  0xdb   : > { %vm1492_vm10 = vcmp.lt.s32.totalorder %v1491_v61, 0 }
  0xdc   : > { %v508_v62 = vsel %vm1492_vm10, 0, %v1491_v61  ;;  %vm1022_vm10 = vcmask 1045509  }
  0xdd   : > { %v509_v0 = vsub.s32 32, %v508_v62  ;;  %v513_v1 = vsub.s32 4294967266, %v508_v62  ;;  %v510_v2 = vshll.u32 %v501_v57, %v508_v62 }
  0xdf   : > { %v511_v3 = vshrl.u32 %v493_v63, %v509_v0  ;;  %v514_v11 = vadd.s32 127, %v513_v1 }
  0xe1   : > { %v512_v12 = vor.u32 %v511_v3, %v510_v2  ;;  %v515_v13 = vshll.u32 %v514_v11, 23 }
  0xe3   : > { %v516_v14 = vor.u32 4788187, %v515_v13  ;;  %v519_v16 = vcvt.s32.f32 %v512_v12 }
  0xe5   : > { %v517_v15 = vand.u32 2147483647, %v516_v14 }
  0xe7   : > { %v520_v17 = vmul.f32 %v519_v16, %v517_v15 }
  0xe9   : > { %v521_v18 = vxor.u32 2147483648, %v520_v17 }
  0xeb   : > { %v522_v19 = vsel %vm439_vm11, %v521_v18, %v520_v17  ;;  %vm1024_vm11 = vcmask 1046534  }
  0xec   : > { %v525_v20 = vsel %vm438_vm12, %v1806_v34, %v522_v19  ;;  %vm1026_vm12 = vcmask 1047559  }
  0xed   : > { %1650 = vcosq.f32 %v525_v20 }
  0xee   : > { %1652 = vsinq.f32 %v525_v20 }
  0xfa   : > { %v1651_v25 = vpop.eup %1650 }
  0xfb   : > { %v1653_v26 = vpop.eup %1652  ;;  %v536_v27 = vxor.u32 2147483648, %v1651_v25 }
  0xfc   : > { %v533_v28 = vxor.u32 2147483648, %v1653_v26 }
  0xfd   : > { %v537_v30 = vsel %vm535_vm13, %v536_v27, %v1653_v26  ;;  %vm1696_vm13 = vmmov 0  }
  0xfe   : > { %v534_v31 = vsel %vm532_vm14, %v1651_v25, %v533_v28  ;;  %1559 = vmatprep.mubr.msk.f32.mxu0 %vm1696_vm13, %v1686_v4  ;;  %1594 = vmatprep.mubr.msk.f32.mxu1 %vm1696_vm13, %v1686_v4  ;;  %vm1084_vm14 = vcmask 261120  }
  0xff   : > { %v538_v32 = vsel %vm531_vm15, %v534_v31, %v537_v30  ;;  %vm1086_vm15 = vcmask 392192  }
 0x100   : > { %v539_v37 = vsel %vm529_vm0, nan, %v538_v32  ;;  %vm1104_vm0 = vcmask 523264  }
 0x101   : > { %v540_v38 = vmul.f32 0.5, %v539_v37 }
 0x103   : > { %v541_v39 = vadd.f32 0.5, %v540_v38 }
 0x105   : > { %v542_v40 = vsel %vm433_vm2, %v541_v39, 0.0 }
 0x106   : > { %v544_v42 = vsel %vm543_vm1, %v542_v40, 0.0 }
 0x107   : > { %v548_v43 = vmul.f32 0.25, %v544_v42 }
 0x109   : > { %v559_v44 = vrot.slane %v548_v43, %v1790_v10  ;;  %v552_v45 = vrot.slane %v548_v43, %v1782_v7  ;;  %v573_v34 = vrot.slane %v548_v43, %v1810_v36  ;;  %v566_v46 = vrot.slane %v548_v43, %v1785_v8 }
 0x10a   : > { %v580_v47 = vrot.slane %v548_v43, %v579_v33  ;;  %v587_v7 = vrot.slane %v548_v43, %v586_v41  ;;  %v601_v10 = vrot.slane %v548_v43, %v600_v50  ;;  %v1493_v8 = vsel %vm709_vm4, 1.0, %v1686_v4  ;;  %v1096_v41 = vld [vmem:[%s2301_s3 + $0x38] sm:$0xff]  ;;  %v1095_v50 = vld [vmem:[%s2301_s3 + $0x30] sm:$0xff] }
 0x10b   : > { %561 = vbcast.lane.b32.xlu1 %v559_v44, 256  ;;  %554 = vbcast.lane.b32.xlu0 %v552_v45, 256  ;;  %v594_v48 = vrot.slane %v548_v43, %v593_v35  ;;  %v715_v33 = vrot.slane %v1493_v8, %v1810_v36  ;;  %v1092_v35 = vld [vmem:[%s2301_s3 + $0x18] sm:$0xff]  ;;  %v545_v36 = vcvt.s32.f32 %v1855_v51  ;;  %vm1398_vm4 = vcmask 31744  }
 0x10c   : > { %1544 = vmatpush3.msra.mxu0 %v1096_v41 }
 0x10d   : > { %1545 = vmatprep.subr.mxu0 %v1686_v4  ;;  %v546_v49 = vmul.f32 0.26666668, %v545_v36 }
 0x10e   : > { %1546 = vmatpush3.msra.mxu0 %v1095_v50 }
 0x10f   : > { %575 = vbcast.lane.b32.xlu1 %v573_v34, 256  ;;  %568 = vbcast.lane.b32.xlu0 %v566_v46, 256  ;;  %v547_v53 = vadd.f32 0.9, %v546_v49 }
 0x110   : > { %1547 = vmatprep.subr.mxu0 %v1686_v4 }
 0x111   : > { %1548 = vmatpush3.msra.mxu0 %v1094_v6 }
 0x112   : > { %1549 = vmatprep.subr.mxu0 %v1686_v4 }
 0x113   : > { %582 = vbcast.lane.b32.xlu1 %v580_v47, 256  ;;  %940 = vbcast.lane.b32.xlu0 %v938_v29, 256 }
 0x114   : > { %1550 = vmatpush3.msra.mxu0 %v1093_v9 }
 0x115   : > { %1551 = vmatprep.subr.mxu0 %v1686_v4 }
 0x116   : > { %1552 = vmatpush3.msra.mxu0 %v1092_v35 }
 0x117   : > { %589 = vbcast.lane.b32.xlu1 %v587_v7, 256  ;;  %603 = vbcast.lane.b32.xlu0 %v601_v10, 256 }
 0x118   : > { %1553 = vmatprep.subr.mxu0 %v1686_v4 }
 0x11b   : > { %596 = vbcast.lane.b32.xlu1 %v594_v48, 256 }
 0x11e   : > { %v611_v52 = vpop.permute.xlu1 %610  ;;  %v625_v56 = vpop.permute.xlu0 %624 }
 0x11f   : > { %717 = vbcast.lane.b32.xlu1 %v715_v33, 256  ;;  %v661_v55 = vsub.f32 %v611_v52, %v547_v53  ;;  %v663_v61 = vsub.f32 %v625_v56, %v547_v53 }
 0x121   : > { %v669_v58 = vmul.f32 %v661_v55, %v661_v55  ;;  %v671_v2 = vmul.f32 %v663_v61, %v663_v61 }
 0x122   : > { %v618_v54 = vpop.permute.xlu1 %617  ;;  %v639_v62 = vpop.permute.xlu0 %638 }
 0x123   : > { %v662_v57 = vsub.f32 %v618_v54, %v547_v53  ;;  %v677_v0 = vmul.f32 -16.0, %v669_v58  ;;  %v679_v15 = vmul.f32 -16.0, %v671_v2  ;;  %v665_v16 = vsub.f32 %v639_v62, %v547_v53 }
 0x125   : > { %v670_v60 = vmul.f32 %v662_v57, %v662_v57  ;;  %v685_v12 = vmul.f32 1.442695, %v677_v0  ;;  %v689_v20 = vmul.f32 1.442695, %v679_v15  ;;  %v673_v23 = vmul.f32 %v665_v16, %v665_v16 }
 0x126   : > { %v632_v59 = vpop.permute.xlu1 %631  ;;  %v653_v14 = vpop.permute.xlu0 %652 }
 0x127   : > { %v664_v63 = vsub.f32 %v632_v59, %v547_v53  ;;  %v678_v1 = vmul.f32 -16.0, %v670_v60  ;;  %1654 = vpow2.f32 %v685_v12  ;;  %v667_v18 = vsub.f32 %v653_v14, %v547_v53 }
 0x128   : > { %v681_v28 = vmul.f32 -16.0, %v673_v23 }
 0x129   : > { %v672_v3 = vmul.f32 %v664_v63, %v664_v63  ;;  %v687_v13 = vmul.f32 1.442695, %v678_v1  ;;  %v675_v25 = vmul.f32 %v667_v18, %v667_v18 }
 0x12a   : > { %v646_v11 = vpop.permute.xlu1 %645  ;;  %v1902_v22 = vpop.permute.xlu0 %792  ;;  %v693_v38 = vmul.f32 1.442695, %v681_v28 }
 0x12b   : > { %v680_v17 = vmul.f32 -16.0, %v672_v3  ;;  %1656 = vpow2.f32 %v687_v13  ;;  %v666_v21 = vsub.f32 %v646_v11, %v547_v53  ;;  %v683_v30 = vmul.f32 -16.0, %v675_v25 }
 0x12c   : > { %1658 = vpow2.f32 %v689_v20 }
 0x12d   : > { %v691_v24 = vmul.f32 1.442695, %v680_v17  ;;  %v674_v27 = vmul.f32 %v666_v21, %v666_v21  ;;  %v697_v39 = vmul.f32 1.442695, %v683_v30 }
 0x12e   : > { %v660_v19 = vpop.permute.xlu1 %659  ;;  %v1904_v32 = vpop.permute.xlu0 %866 }
 0x12f   : > { %v668_v26 = vsub.f32 %v660_v19, %v547_v53  ;;  %1660 = vpow2.f32 %v691_v24  ;;  %v682_v37 = vmul.f32 -16.0, %v674_v27 }
 0x130   : > { %1662 = vpow2.f32 %v693_v38 }
 0x131   : > { %v676_v31 = vmul.f32 %v668_v26, %v668_v26  ;;  %v695_v44 = vmul.f32 1.442695, %v682_v37  ;;  %1664 = vpow2.f32 %v697_v39 }
 0x133   : > { %v684_v40 = vmul.f32 -16.0, %v676_v31  ;;  %1666 = vpow2.f32 %v695_v44 }
 0x134   : > { %v1655_v42 = vpop.eup %1654 }
 0x135   : > { %v699_v29 = vmul.f32 1.442695, %v684_v40 }
 0x137   : > { %1668 = vpow2.f32 %v699_v29 }
 0x138   : > { %v1657_v43 = vpop.eup %1656 }
 0x139   : > { %v1659_v41 = vpop.eup %1658 }
 0x13c   : > { %v1661_v49 = vpop.eup %1660 }
 0x13d   : > { %v1663_v27 = vpop.eup %1662 }
 0x13e   : > { %v1938_v38 = vpop.eup %1664 }
 0x17d   : > { %v562_v45 = vpop.permute.xlu1 %561  ;;  %v555_v5 = vpop.permute.xlu0 %554 }
 0x17e   : > { %v1906_v34 = vmul.f32 %v1657_v43, %v562_v45  ;;  %v1908_v46 = vmul.f32 %v1655_v42, %v555_v5 }
 0x180   : > { %v795_v47 = vmul.f32 %v1902_v22, %v1906_v34  ;;  %v869_v7 = vmul.f32 %v1904_v32, %v1906_v34  ;;  %v794_v10 = vmul.f32 %v1902_v22, %v1908_v46  ;;  %v868_v8 = vmul.f32 %v1904_v32, %v1908_v46 }
 0x181   : > { %v576_v48 = vpop.permute.xlu1 %575  ;;  %v569_v33 = vpop.permute.xlu0 %568 }
 0x182   : > { %v809_v50 = vsel %vm727_vm5, %v795_v47, 0.0  ;;  %v883_v6 = vsel %vm727_vm5, %v869_v7, 0.0  ;;  %v802_v9 = vsel %vm727_vm5, %v794_v10, 0.0  ;;  %v876_v35 = vsel %vm727_vm5, %v868_v8, 0.0  ;;  %v1667_v7 = vpop.eup %1666 }
 0x183   : > { %v810_v52 = vrot.slane %v809_v50, 4  ;;  %v884_v53 = vrot.slane %v883_v6, 4  ;;  %v803_v54 = vrot.slane %v802_v9, 4  ;;  %v877_v55 = vrot.slane %v876_v35, 4 }
 0x184   : > { %v1922_v56 = vmul.f32 %v1661_v49, %v576_v48  ;;  %v1924_v57 = vmul.f32 %v1659_v41, %v569_v33 }
 0x185   : > { %v811_v58 = vadd.f32 %v810_v52, %v809_v50  ;;  %v885_v59 = vadd.f32 %v884_v53, %v883_v6  ;;  %v804_v60 = vadd.f32 %v803_v54, %v802_v9  ;;  %v878_v61 = vadd.f32 %v877_v55, %v876_v35  ;;  %v583_v17 = vpop.permute.xlu1 %582  ;;  %v1940_v44 = vpop.permute.xlu0 %940 }
 0x186   : > { %v797_v62 = vmul.f32 %v1902_v22, %v1922_v56  ;;  %v871_v63 = vmul.f32 %v1904_v32, %v1922_v56  ;;  %v796_v0 = vmul.f32 %v1902_v22, %v1924_v57  ;;  %v870_v1 = vmul.f32 %v1904_v32, %v1924_v57  ;;  %v1669_v55 = vpop.eup %1668 }
 0x187   : > { %v812_v2 = vrot.slane %v811_v58, 2  ;;  %v886_v3 = vrot.slane %v885_v59, 2  ;;  %v805_v11 = vrot.slane %v804_v60, 2  ;;  %v879_v12 = vrot.slane %v878_v61, 2 }
 0x188   : > { %v823_v13 = vsel %vm727_vm5, %v797_v62, 0.0  ;;  %v897_v14 = vsel %vm727_vm5, %v871_v63, 0.0  ;;  %v816_v15 = vsel %vm727_vm5, %v796_v0, 0.0  ;;  %v890_v16 = vsel %vm727_vm5, %v870_v1, 0.0 }
 0x189   : > { %v813_v18 = vadd.f32 %v812_v2, %v811_v58  ;;  %v887_v19 = vadd.f32 %v886_v3, %v885_v59  ;;  %v806_v20 = vadd.f32 %v805_v11, %v804_v60  ;;  %v880_v21 = vadd.f32 %v879_v12, %v878_v61  ;;  %v590_v41 = vpop.permute.xlu1 %589 }
 0x18a   : > { %v824_v23 = vrot.slane %v823_v13, 4  ;;  %v898_v24 = vrot.slane %v897_v14, 4  ;;  %v817_v25 = vrot.slane %v816_v15, 4  ;;  %v891_v26 = vrot.slane %v890_v16, 4 }
 0x18b   : > { %v814_v28 = vrot.slane %v813_v18, 1  ;;  %v888_v30 = vrot.slane %v887_v19, 1  ;;  %v807_v31 = vrot.slane %v806_v20, 1  ;;  %v881_v37 = vrot.slane %v880_v21, 1 }
 0x18c   : > { %v825_v39 = vadd.f32 %v824_v23, %v823_v13  ;;  %v899_v40 = vadd.f32 %v898_v24, %v897_v14  ;;  %v818_v42 = vadd.f32 %v817_v25, %v816_v15  ;;  %v892_v43 = vadd.f32 %v891_v26, %v890_v16  ;;  %v604_v13 = vpop.permute.xlu0 %603 }
 0x18d   : > { %v1942_v45 = vadd.f32 %v814_v28, %v813_v18  ;;  %v1944_v5 = vadd.f32 %v888_v30, %v887_v19  ;;  %v1946_v29 = vadd.f32 %v807_v31, %v806_v20  ;;  %v1948_v47 = vadd.f32 %v881_v37, %v880_v21  ;;  %v597_v18 = vpop.permute.xlu1 %596 }
 0x18e   : > { %v826_v10 = vrot.slane %v825_v39, 2  ;;  %v900_v8 = vrot.slane %v899_v40, 2  ;;  %v819_v48 = vrot.slane %v818_v42, 2  ;;  %v893_v33 = vrot.slane %v892_v43, 2 }
 0x18f   : > { %v1950_v50 = vmul.f32 %v1663_v27, %v583_v17  ;;  %v942_v6 = vmul.f32 %v1940_v44, %v1908_v46  ;;  %v943_v9 = vmul.f32 %v1940_v44, %v1906_v34  ;;  %v944_v35 = vmul.f32 %v1940_v44, %v1924_v57 }
 0x190   : > { %v1958_v49 = vadd.f32 %v826_v10, %v825_v39  ;;  %v1960_v52 = vadd.f32 %v900_v8, %v899_v40  ;;  %v820_v53 = vadd.f32 %v819_v48, %v818_v42  ;;  %v894_v54 = vadd.f32 %v893_v33, %v892_v43 }
 0x191   : > { %v798_v58 = vmul.f32 %v1902_v22, %v1950_v50  ;;  %v872_v59 = vmul.f32 %v1904_v32, %v1950_v50  ;;  %v1968_v60 = vmul.f32 %v1940_v44, %v1922_v56  ;;  %v1972_v61 = vmul.f32 %v1940_v44, %v1950_v50 }
 0x192   : > { %v828_v62 = vrot.slane %v1958_v49, 1  ;;  %v902_v63 = vrot.slane %v1960_v52, 1  ;;  %v821_v0 = vrot.slane %v820_v53, 1  ;;  %v895_v1 = vrot.slane %v894_v54, 1 }
 0x193   : > { %v830_v2 = vsel %vm727_vm5, %v798_v58, 0.0  ;;  %v904_v3 = vsel %vm727_vm5, %v872_v59, 0.0  ;;  %v950_v11 = vsel %vm727_vm5, %v942_v6, 0.0  ;;  %v957_v12 = vsel %vm727_vm5, %v943_v9, 0.0 }
 0x194   : > { %v1980_v14 = vadd.f32 %v821_v0, %v820_v53  ;;  %v1982_v15 = vadd.f32 %v895_v1, %v894_v54  ;;  %v831_v16 = vrot.slane %v830_v2, 4  ;;  %v905_v17 = vrot.slane %v904_v3, 4 }
 0x195   : > { %v951_v19 = vrot.slane %v950_v11, 4  ;;  %v958_v20 = vrot.slane %v957_v12, 4  ;;  %v1985_v21 = vsel %vm727_vm5, %v944_v35, 0.0  ;;  %v706_v23 = vmul.f32 %v1667_v7, %v590_v41  ;;  %v2007_v35 = vpop.permute.xlu1 %717 }
 0x196   : > { %v832_v24 = vadd.f32 %v831_v16, %v830_v2  ;;  %v906_v25 = vadd.f32 %v905_v17, %v904_v3  ;;  %v965_v26 = vrot.slane %v1985_v21, 4  ;;  %v1988_v27 = vmul.f32 %v1669_v55, %v604_v13 }
 0x197   : > { %v1990_v28 = vadd.f32 %v951_v19, %v950_v11  ;;  %v1992_v30 = vadd.f32 %v958_v20, %v957_v12  ;;  %v799_v31 = vmul.f32 %v1902_v22, %v706_v23  ;;  %v873_v37 = vmul.f32 %v1904_v32, %v706_v23 }
 0x198   : > { %v833_v39 = vrot.slane %v832_v24, 2  ;;  %v907_v40 = vrot.slane %v906_v25, 2  ;;  %v947_v42 = vmul.f32 %v1940_v44, %v706_v23  ;;  %v801_v43 = vmul.f32 %v1902_v22, %v1988_v27 }
 0x199   : > { %v837_v7 = vsel %vm727_vm5, %v799_v31, 0.0  ;;  %v911_v10 = vsel %vm727_vm5, %v873_v37, 0.0  ;;  %v875_v8 = vmul.f32 %v1904_v32, %v1988_v27  ;;  %v949_v48 = vmul.f32 %v1940_v44, %v1988_v27 }
 0x19a   : > { %v2005_v33 = vadd.f32 %v833_v39, %v832_v24  ;;  %v908_v41 = vadd.f32 %v907_v40, %v906_v25  ;;  %v838_v6 = vrot.slane %v837_v7, 4  ;;  %v912_v9 = vrot.slane %v911_v10, 4 }
 0x19b   : > { %v985_v53 = vsel %vm727_vm5, %v947_v42, 0.0  ;;  %v2011_v54 = vsel %vm727_vm5, %v801_v43, 0.0  ;;  %v925_v55 = vsel %vm727_vm5, %v875_v8, 0.0  ;;  %v2015_v58 = vsel %vm727_vm5, %v949_v48, 0.0 }
 0x19c   : > { %v2017_v59 = vadd.f32 %v838_v6, %v837_v7  ;;  %v913_v0 = vadd.f32 %v912_v9, %v911_v10  ;;  %v986_v1 = vrot.slane %v985_v53, 4  ;;  %v852_v2 = vrot.slane %v2011_v54, 4 }
 0x19d   : > { %v926_v3 = vrot.slane %v925_v55, 4  ;;  %v1000_v11 = vrot.slane %v2015_v58, 4  ;;  %v2022_v12 = vmul.f32 %v1938_v38, %v597_v18  ;;  %v719_v13 = vmul.f32 %v2007_v35, %v1908_v46 }
 0x19e   : > { %v840_v16 = vrot.slane %v2017_v59, 2  ;;  %v914_v17 = vrot.slane %v913_v0, 2  ;;  %v2027_v19 = vadd.f32 %v986_v1, %v985_v53  ;;  %v720_v20 = vmul.f32 %v2007_v35, %v1906_v34 }
 0x19f   : > { %v800_v24 = vmul.f32 %v1902_v22, %v2022_v12  ;;  %v874_v38 = vmul.f32 %v1904_v32, %v2022_v12  ;;  %v948_v18 = vmul.f32 %v1940_v44, %v2022_v12  ;;  %v721_v46 = vmul.f32 %v2007_v35, %v1924_v57 }
 0x1a0   : > { %v988_v25 = vrot.slane %v2027_v19, 2  ;;  %v722_v31 = vmul.f32 %v2007_v35, %v1922_v56  ;;  %v2044_v34 = vmul.f32 %v2007_v35, %v1950_v50  ;;  %v2047_v22 = vmul.f32 %v2007_v35, %v706_v23 }
 0x1a1   : > { %v844_v32 = vsel %vm727_vm5, %v800_v24, 0.0  ;;  %v918_v44 = vsel %vm727_vm5, %v874_v38, 0.0  ;;  %v992_v37 = vsel %vm727_vm5, %v948_v18, 0.0  ;;  %v728_v57 = vsel %vm727_vm5, %v719_v13, 0.0 }
 0x1a2   : > { %v845_v39 = vrot.slane %v844_v32, 4  ;;  %v919_v40 = vrot.slane %v918_v44, 4  ;;  %v993_v42 = vrot.slane %v992_v37, 4  ;;  %v729_v56 = vrot.slane %v728_v57, 4 }
 0x1a3   : > { %v735_v43 = vsel %vm727_vm5, %v720_v20, 0.0  ;;  %v742_v50 = vsel %vm727_vm5, %v721_v46, 0.0  ;;  %v2056_v23 = vsel %vm727_vm5, %v722_v31, 0.0  ;;  %v903_v7 = vadd.f32 %v902_v63, %v1960_v52 }
 0x1a4   : > { %v846_v10 = vadd.f32 %v845_v39, %v844_v32  ;;  %v920_v8 = vadd.f32 %v919_v40, %v918_v44  ;;  %v2061_v48 = vadd.f32 %v993_v42, %v992_v37  ;;  %v2063_v6 = vadd.f32 %v729_v56, %v728_v57 }
 0x1a5   : > { %v736_v9 = vrot.slane %v735_v43, 4  ;;  %v743_v53 = vrot.slane %v742_v50, 4  ;;  %v750_v1 = vrot.slane %v2056_v23, 4  ;;  %v909_v13 = vrot.slane %v908_v41, 1 }
 0x1a6   : > { %v731_v20 = vrot.slane %v2063_v6, 2  ;;  %v915_v24 = vadd.f32 %v914_v17, %v913_v0  ;;  %v921_v38 = vrot.slane %v920_v8, 2  ;;  %v927_v18 = vadd.f32 %v926_v3, %v925_v55 }
 0x1a7   : > { %v2067_v46 = vadd.f32 %v736_v9, %v735_v43  ;;  %v2069_v52 = vadd.f32 %v743_v53, %v742_v50  ;;  %v910_v63 = vadd.f32 %v909_v13, %v908_v41  ;;  %v1055_v31 = vsel %vm1014_vm6, %v1944_v5, %v1948_v47  ;;  %v1091_v5 = vld [vmem:[%s2301_s3 + $0x10] sm:$0xff]  ;;  %v1090_v47 = vld [vmem:[%s2301_s3 + $0x8] sm:$0xff] }
 0x1a8   : > { %v916_v32 = vrot.slane %v915_v24, 1  ;;  %v922_v44 = vadd.f32 %v921_v38, %v920_v8  ;;  %v928_v37 = vrot.slane %v927_v18, 2  ;;  %v1056_v57 = vsel %vm1016_vm7, %v1982_v15, %v1055_v31  ;;  %1554 = vmatpush3.msra.mxu0 %v1091_v5 }
 0x1a9   : > { %v738_v39 = vrot.slane %v2067_v46, 2  ;;  %v1057_v0 = vsel %vm1018_vm8, %v903_v7, %v1056_v57  ;;  %v829_v55 = vadd.f32 %v828_v62, %v1958_v49  ;;  %v835_v41 = vrot.slane %v2005_v33, 1  ;;  %1555 = vmatprep.subr.mxu0 %v1686_v4 }
 0x1aa   : > { %v917_v3 = vadd.f32 %v916_v32, %v915_v24  ;;  %v923_v15 = vrot.slane %v922_v44, 1  ;;  %v929_v17 = vadd.f32 %v928_v37, %v927_v18  ;;  %v1058_v40 = vsel %vm1020_vm9, %v910_v63, %v1057_v0  ;;  %1556 = vmatpush3.msra.mxu0 %v1090_v47 }
 0x1ab   : > { %v836_v42 = vadd.f32 %v835_v41, %v2005_v33  ;;  %v841_v49 = vadd.f32 %v840_v16, %v2017_v59  ;;  %v847_v62 = vrot.slane %v846_v10, 2  ;;  %v853_v56 = vadd.f32 %v852_v2, %v2011_v54  ;;  %1557 = vmatprep.subr.mxu0 %v1686_v4 }
 0x1ac   : > { %v924_v43 = vadd.f32 %v923_v15, %v922_v44  ;;  %v930_v50 = vrot.slane %v929_v17, 1  ;;  %v1059_v7 = vsel %vm1022_vm10, %v917_v3, %v1058_v40  ;;  %v1037_v8 = vsel %vm1014_vm6, %v1942_v45, %v1946_v29 }
 0x1ad   : > { %v842_v9 = vrot.slane %v841_v49, 1  ;;  %v848_v33 = vadd.f32 %v847_v62, %v846_v10  ;;  %v854_v53 = vrot.slane %v853_v56, 2  ;;  %v1038_v59 = vsel %vm1016_vm7, %v1980_v14, %v1037_v8 }
 0x1ae   : > { %v931_v54 = vadd.f32 %v930_v50, %v929_v17  ;;  %v1060_v2 = vsel %vm1024_vm11, %v924_v43, %v1059_v7  ;;  %v1039_v16 = vsel %vm1018_vm8, %v829_v55, %v1038_v59  ;;  %v953_v13 = vrot.slane %v1990_v28, 2 }
 0x1af   : > { %v843_v24 = vadd.f32 %v842_v9, %v841_v49  ;;  %v849_v38 = vrot.slane %v848_v33, 1  ;;  %v855_v18 = vadd.f32 %v854_v53, %v853_v56  ;;  %v1040_v45 = vsel %vm1020_vm9, %v836_v42, %v1039_v16  ;;  %v1089_v53 = vld [vmem:[%s2301_s3] sm:$0xff] }
 0x1b0   : > { %v1061_v29 = vsel %vm1026_vm12, %v931_v54, %v1060_v2  ;;  %v954_v10 = vadd.f32 %v953_v13, %v1990_v28  ;;  %v960_v14 = vrot.slane %v1992_v30, 2  ;;  %v966_v63 = vadd.f32 %v965_v26, %v1985_v21  ;;  %1558 = vmatpush3.msra.mxu0 %v1089_v53 }
 0x1b1   : > { %1062 = vrot.lane.b32.xlu1 %v1061_v29, %s1693_s21  ;;  %v850_v31 = vadd.f32 %v849_v38, %v848_v33  ;;  %v856_v32 = vrot.slane %v855_v18, 1  ;;  %v1041_v44 = vsel %vm1022_vm10, %v843_v24, %v1040_v45  ;;  %v971_v37 = vsel %vm727_vm5, %v1968_v60, 0.0  ;;  %1597 = vmatprep.subr.mxu0 %v1686_v4 }
 0x1b2   : > { %v955_v57 = vrot.slane %v954_v10, 1  ;;  %v961_v0 = vadd.f32 %v960_v14, %v1992_v30  ;;  %v967_v55 = vrot.slane %v966_v63, 2  ;;  %v972_v28 = vrot.slane %v971_v37, 4 }
 0x1b3   : > { %v857_v41 = vadd.f32 %v856_v32, %v855_v18  ;;  %v1042_v5 = vsel %vm1024_vm11, %v850_v31, %v1041_v44  ;;  %v978_v21 = vsel %vm727_vm5, %v1972_v61, 0.0  ;;  %v989_v26 = vadd.f32 %v988_v25, %v2027_v19 }
 0x1b4   : > { %v956_v47 = vadd.f32 %v955_v57, %v954_v10  ;;  %v962_v3 = vrot.slane %v961_v0, 1  ;;  %v968_v15 = vadd.f32 %v967_v55, %v966_v63  ;;  %v973_v17 = vadd.f32 %v972_v28, %v971_v37 }
 0x1b5   : > { %v1043_v60 = vsel %vm1026_vm12, %v857_v41, %v1042_v5  ;;  %v979_v40 = vrot.slane %v978_v21, 4  ;;  %v990_v30 = vrot.slane %v989_v26, 1  ;;  %v995_v42 = vrot.slane %v2061_v48, 2 }
 0x1b6   : > { %1044 = vrot.lane.b32.xlu0 %v1043_v60, %s1694_s22  ;;  %v963_v49 = vadd.f32 %v962_v3, %v961_v0  ;;  %v969_v62 = vrot.slane %v968_v15, 1  ;;  %v974_v56 = vrot.slane %v973_v17, 2  ;;  %v1001_v61 = vadd.f32 %v1000_v11, %v2015_v58 }
 0x1b7   : > { %v980_v19 = vadd.f32 %v979_v40, %v978_v21  ;;  %v991_v25 = vadd.f32 %v990_v30, %v989_v26  ;;  %v996_v43 = vadd.f32 %v995_v42, %v2061_v48  ;;  %v725_v50 = vmul.f32 %v2007_v35, %v2022_v12  ;;  %v1216_v12 = vld [vmem:[%s2304_s6 + $0x78] sm:$0xff] }
 0x1b8   : > { %v970_v7 = vadd.f32 %v969_v62, %v968_v15  ;;  %v975_v8 = vadd.f32 %v974_v56, %v973_v17  ;;  %v1002_v9 = vrot.slane %v1001_v61, 2  ;;  %v1073_v33 = vsel %vm1014_vm6, %v963_v49, %v956_v47  ;;  %1563 = vmatpush3.msra.mxu1 %v1216_v12 }
 0x1b9   : > { %v981_v59 = vrot.slane %v980_v19, 2  ;;  %v997_v54 = vrot.slane %v996_v43, 1  ;;  %v732_v58 = vadd.f32 %v731_v20, %v2063_v6  ;;  %v739_v11 = vadd.f32 %v738_v39, %v2067_v46  ;;  %v1088_v20 = vld [vmem:[%s383_s27] sm:$0xff]  ;;  %1564 = vmatprep.subr.mxu1 %v1686_v4 }
 0x1ba   : > { %v976_v48 = vrot.slane %v975_v8, 1  ;;  %v1003_v2 = vadd.f32 %v1002_v9, %v1001_v61  ;;  %v1074_v16 = vsel %vm1016_vm7, %v970_v7, %v1073_v33  ;;  %v745_v6 = vrot.slane %v2069_v52, 2  ;;  %1181 = vperm.xlu1 %1646, %v1088_v20  }
 0x1bb   : > { %v982_v46 = vadd.f32 %v981_v59, %v980_v19  ;;  %v998_v39 = vadd.f32 %v997_v54, %v996_v43  ;;  %v733_v13 = vrot.slane %v732_v58, 1  ;;  %v740_v24 = vrot.slane %v739_v11, 1 }
 0x1bc   : > { %v977_v38 = vadd.f32 %v976_v48, %v975_v8  ;;  %v1004_v18 = vrot.slane %v1003_v2, 1  ;;  %v746_v45 = vadd.f32 %v745_v6, %v2069_v52  ;;  %v751_v29 = vadd.f32 %v750_v1, %v2056_v23 }
 0x1bd   : > { %v983_v10 = vrot.slane %v982_v46, 1  ;;  %v734_v14 = vadd.f32 %v733_v13, %v732_v58  ;;  %v741_v63 = vadd.f32 %v740_v24, %v739_v11  ;;  %v756_v31 = vsel %vm727_vm5, %v2044_v34, 0.0 }
 0x1be   : > { %v1005_v32 = vadd.f32 %v1004_v18, %v1003_v2  ;;  %v1075_v44 = vsel %vm1018_vm8, %v977_v38, %v1074_v16  ;;  %v747_v37 = vrot.slane %v746_v45, 1  ;;  %v752_v57 = vrot.slane %v751_v29, 2  ;;  %v1215_v18 = vld [vmem:[%s2304_s6 + $0x70] sm:$0xff] }
 0x1bf   : > { %v984_v0 = vadd.f32 %v983_v10, %v982_v46  ;;  %v757_v55 = vrot.slane %v756_v31, 4  ;;  %v763_v52 = vsel %vm727_vm5, %v2047_v22, 0.0  ;;  %v770_v28 = vsel %vm727_vm5, %v725_v50, 0.0  ;;  %1565 = vmatpush3.msra.mxu1 %v1215_v18  ;;  %v1212_v10 = vld [vmem:[%s2304_s6 + $0x58] sm:$0xff] }
 0x1c0   : > { %v748_v41 = vadd.f32 %v747_v37, %v746_v45  ;;  %v753_v23 = vadd.f32 %v752_v57, %v751_v29  ;;  %v764_v1 = vrot.slane %v763_v52, 4  ;;  %v771_v5 = vrot.slane %v770_v28, 4  ;;  %v1214_v45 = vld [vmem:[%s2304_s6 + $0x68] sm:$0xff]  ;;  %1566 = vmatprep.subr.mxu1 %v1686_v4  ;;  %v1213_v29 = vld [vmem:[%s2304_s6 + $0x60] sm:$0xff] }
 0x1c1   : > { %v1076_v21 = vsel %vm1020_vm9, %v984_v0, %v1075_v44  ;;  %v758_v26 = vadd.f32 %v757_v55, %v756_v31  ;;  %v1015_v34 = vsel %vm1014_vm6, %v741_v63, %v734_v14  ;;  %v726_v47 = vmul.f32 %v2007_v35, %v1988_v27  ;;  %1567 = vmatpush3.msra.mxu1 %v1214_v45  ;;  %v1211_v14 = vld [vmem:[%s2304_s6 + $0x50] sm:$0xff]  ;;  %v1210_v63 = vld [vmem:[%s2304_s6 + $0x48] sm:$0xff]  ;;  %v1209_v31 = vld [vmem:[%s2304_s6 + $0x40] sm:$0xff] }
 0x1c2   : > { %v1077_v3 = vsel %vm1022_vm10, %v991_v25, %v1076_v21  ;;  %v754_v15 = vrot.slane %v753_v23, 1  ;;  %v765_v17 = vadd.f32 %v764_v1, %v763_v52  ;;  %v772_v60 = vadd.f32 %v771_v5, %v770_v28  ;;  %1568 = vmatprep.subr.mxu1 %v1686_v4  ;;  %v1207_v44 = vld [vmem:[%s2304_s6 + $0x30] sm:$0xff]  ;;  %v1206_v37 = vld [vmem:[%s2304_s6 + $0x28] sm:$0xff]  ;;  %v1205_v57 = vld [vmem:[%s2304_s6 + $0x20] sm:$0xff] }
 0x1c3   : > { %v1078_v22 = vsel %vm1024_vm11, %v998_v39, %v1077_v3  ;;  %v759_v40 = vrot.slane %v758_v26, 2  ;;  %v1017_v30 = vsel %vm1016_vm7, %v748_v41, %v1015_v34  ;;  %v777_v42 = vsel %vm727_vm5, %v726_v47, 0.0  ;;  %1569 = vmatpush3.msra.mxu1 %v1213_v29  ;;  %v1204_v0 = vld [vmem:[%s2304_s6 + $0x18] sm:$0xff]  ;;  %v1203_v55 = vld [vmem:[%s2304_s6 + $0x10] sm:$0xff]  ;;  %v1202_v52 = vld [vmem:[%s2304_s6 + $0x8] sm:$0xff] }
 0x1c4   : > { %v1079_v49 = vsel %vm1026_vm12, %v1005_v32, %v1078_v22  ;;  %v755_v62 = vadd.f32 %v754_v15, %v753_v23  ;;  %v766_v56 = vrot.slane %v765_v17, 2  ;;  %v773_v61 = vrot.slane %v772_v60, 2  ;;  %1570 = vmatprep.subr.mxu1 %v1686_v4  ;;  %v1208_v32 = vld [vmem:[%s2304_s6 + $0x38] sm:$0xff]  ;;  %v1201_v28 = vld [vmem:[%s2304_s6] sm:$0xff] }
 0x1c5   : > { %1080 = vrot.lane.b32.xlu0 %v1079_v49, %s1695_s15  ;;  %v760_v27 = vadd.f32 %v759_v40, %v758_v26  ;;  %v778_v35 = vrot.slane %v777_v42, 4  ;;  %1571 = vmatpush3.msra.mxu1 %v1212_v10  ;;  %v1499_v41 = vld [vmem:[%s2303_s5] ss:$0 sm:$0xff]  ;;  %v1308_v49 = vld [vmem:[%s2306_s8 + $0x30] sm:$0xff] }
 0x1c6   : > { %v767_v19 = vadd.f32 %v766_v56, %v765_v17  ;;  %v774_v25 = vadd.f32 %v773_v61, %v772_v60  ;;  %v1019_v43 = vsel %vm1018_vm8, %v755_v62, %v1017_v30  ;;  %1572 = vmatprep.subr.mxu1 %v1686_v4  ;;  %v1497_v1 = vld [vmem:[%s2302_s4] ss:$0 sm:$0xff]  ;;  %v1307_v62 = vld [vmem:[%s2306_s8 + $0x28] sm:$0xff]  ;;  %v1697_v56 = vmov 3  }
 0x1c7   : > { %v761_v50 = vrot.slane %v760_v27, 1  ;;  %v779_v7 = vadd.f32 %v778_v35, %v777_v42  ;;  %1573 = vmatpush3.msra.mxu1 %v1211_v14  ;;  %v1309_v42 = vld [vmem:[%s2306_s8 + $0x38] sm:$0xff]  ;;  %1647 = vset.pattern.permute.xlu0 %v1697_v56  ;;  %v1674_v61 = vld [vmem:[%s1769_s18] sm:$0xff] }
 0x1c8   : > { %v768_v8 = vrot.slane %v767_v19, 1  ;;  %v775_v9 = vrot.slane %v774_v25, 1  ;;  %1574 = vmatprep.subr.mxu1 %v1686_v4  ;;  %v1305_v35 = vld [vmem:[%s2306_s8 + $0x18] sm:$0xff] }
 0x1c9   : > { %v762_v33 = vadd.f32 %v761_v50, %v760_v27  ;;  %v780_v53 = vrot.slane %v779_v7, 2  ;;  %1575 = vmatpush3.msra.mxu1 %v1210_v63  ;;  %1391 = vperm.xlu0 %1647, %v1674_v61   ;;  %v1306_v27 = vld [vmem:[%s2306_s8 + $0x20] sm:$0xff] }
 0x1ca   : > { %v769_v59 = vadd.f32 %v768_v8, %v767_v19  ;;  %v776_v54 = vadd.f32 %v775_v9, %v774_v25  ;;  %1576 = vmatprep.subr.mxu1 %v1686_v4  ;;  %v1304_v19 = vld [vmem:[%s2306_s8 + $0x10] sm:$0xff]  ;;  %v1303_v25 = vld [vmem:[%s2306_s8 + $0x8] sm:$0xff]  ;;  %v1501_v50 = vld [vmem:[%s2305_s7] ss:$0 sm:$0xff] }
 0x1cb   : > { %v1021_v58 = vsel %vm1020_vm9, %v762_v33, %v1019_v43  ;;  %v781_v11 = vadd.f32 %v780_v53, %v779_v7  ;;  %1577 = vmatpush3.msra.mxu1 %v1209_v31  ;;  %v1302_v43 = vld [vmem:[%s2306_s8] sm:$0xff] }
 0x1cc   : > { %v1023_v12 = vsel %vm1022_vm10, %v769_v59, %v1021_v58  ;;  %1578 = vmatprep.subr.mxu1 %v1686_v4 }
 0x1cd   : > { %v1025_v48 = vsel %vm1024_vm11, %v776_v54, %v1023_v12  ;;  %v782_v2 = vrot.slane %v781_v11, 1  ;;  %1579 = vmatpush3.msra.mxu1 %v1208_v32 }
 0x1ce   : > { %1580 = vmatprep.subr.mxu1 %v1686_v4 }
 0x1cf   : > { %v783_v16 = vadd.f32 %v782_v2, %v781_v11  ;;  %1581 = vmatpush3.msra.mxu1 %v1207_v44  ;;  %v1503_v2 = vld [vmem:[%s2307_s9] ss:$0 sm:$0xff] }
 0x1d0   : > { %1582 = vmatprep.subr.mxu1 %v1686_v4 }
 0x1d1   : > { %v1027_v6 = vsel %vm1026_vm12, %v783_v16, %v1025_v48  ;;  %1583 = vmatpush3.msra.mxu1 %v1206_v37 }
 0x1d2   : > { %1584 = vmatprep.subr.mxu1 %v1686_v4 }
 0x1d3   : > { %1585 = vmatpush3.msra.mxu1 %v1205_v57 }
 0x1d4   : > { %1586 = vmatprep.subr.mxu1 %v1686_v4 }
 0x1d5   : > { %1587 = vmatpush3.msra.mxu1 %v1204_v0 }
 0x1d6   : > { %1588 = vmatprep.subr.mxu1 %v1686_v4 }
 0x1d7   : > { %1589 = vmatpush3.msra.mxu1 %v1203_v55 }
 0x1d8   : > { %1590 = vmatprep.subr.mxu1 %v1686_v4 }
 0x1d9   : > { %1591 = vmatpush3.msra.mxu1 %v1202_v52 }
 0x1da   : > { %1592 = vmatprep.subr.mxu1 %v1686_v4 }
 0x1db   : > { %1593 = vmatpush3.msra.mxu1 %v1201_v28 }
 0x223   : > { %v1063_v46 = vpop.permute.xlu1 %1062 }
 0x228   : > { %v1045_v20 = vpop.permute.xlu0 %1044 }
 0x229   : > { %v1083_v39 = vsel %vm727_vm5, %v1027_v6, %v1045_v20  ;;  %vm1408_vm5 = vcmask 0  }
 0x22a   : > { %v1085_v24 = vsel %vm1084_vm14, %v1083_v39, %v1063_v46 }
 0x235   : > { %v1182_v23 = vpop.permute.xlu1 %1181 }
 0x236   : > { %v1190_v5 = vmul.f32 %v1499_v41, %v1182_v23 }
 0x237   : > { %v1081_v13 = vpop.permute.xlu0 %1080 }
 0x238   : > { %v1087_v38 = vsel %vm1086_vm15, %v1085_v24, %v1081_v13 }
 0x239   : > { %1560 = vmatmul.mubr.msk.f32.vlgmr.msra.gmra.mxu0 %vm1104_vm0, %v1087_v38 }
 0x23a   : > { %1613 = vmatprep.mubr.msk.f32.mxu0 %vm1696_vm13, %v1686_v4  ;;  %1598 = vmatpush3.msra.mxu0 %v1309_v42 }
 0x23b   : > { %1599 = vmatprep.subr.mxu0 %v1686_v4 }
 0x23c   : > { %1600 = vmatpush3.msra.mxu0 %v1308_v49 }
 0x23d   : > { %1601 = vmatprep.subr.mxu0 %v1686_v4 }
 0x23e   : > { %1602 = vmatpush3.msra.mxu0 %v1307_v62 }
 0x23f   : > { %1603 = vmatprep.subr.mxu0 %v1686_v4 }
 0x240   : > { %1604 = vmatpush3.msra.mxu0 %v1306_v27 }
 0x241   : > { %1605 = vmatprep.subr.mxu0 %v1686_v4 }
 0x242   : > { %1606 = vmatpush3.msra.mxu0 %v1305_v35 }
 0x243   : > { %1607 = vmatprep.subr.mxu0 %v1686_v4 }
 0x244   : > { %1608 = vmatpush3.msra.mxu0 %v1304_v19  ;;  %v1392_v48 = vpop.permute.xlu0 %1391 }
 0x245   : > { %1609 = vmatprep.subr.mxu0 %v1686_v4  ;;  %vm1394_vm3 = vcmp.eq.f32.partialorder %v1392_v48, %v545_v36 }
 0x246   : > { %1610 = vmatpush3.msra.mxu0 %v1303_v25  ;;  %v1505_v16 = vsel %vm1394_vm3, 1.0, %v1686_v4 }
 0x247   : > { %1611 = vmatprep.subr.mxu0 %v1686_v4 }
 0x248   : > { %1612 = vmatpush3.msra.mxu0 %v1302_v43 }
 0x2f9   : > { %v1174_v21 = vpop.f32.mrf.mxu0 }
 0x2fa   : > { %v1175_v26 = vadd.f32 %v1497_v1, %v1174_v21 }
 0x2fb   : > { %v1561_v34 = vpop.f32.mrf.mxu0 }
 0x2fc   : > { %v1191_v47 = vadd.f32 %v1190_v5, %v1175_v26 }
 0x2fe   : > { %v1193_v3 = vmin.f32 %v1191_v47, 0.0  ;;  %vm1192_vm1 = vcmp.gt.f32.partialorder %v1191_v47, 0.0 }
 0x300   : > { %v1195_v15 = vmul.f32 10.0, %v1193_v3 }
 0x302   : > { %v1196_v17 = vmul.f32 1.442695, %v1195_v15 }
 0x304   : > { %1670 = vpow2.f32 %v1196_v17 }
 0x311   : > { %v1671_v60 = vpop.eup %1670 }
 0x312   : > { %v1500_v22 = vadd.f32 -1.0, %v1671_v60 }
 0x314   : > { %v1199_v40 = vmul.f32 0.1, %v1500_v22 }
 0x316   : > { %v1200_v30 = vsel %vm1192_vm1, %v1191_v47, %v1199_v40 }
 0x317   : > { %1595 = vmatmul.mubr.f32.vlgmr.msra.gmra.mxu1 %v1200_v30 }
 0x3d7   : > { %v1290_v7 = vpop.f32.mrf.mxu1 }
 0x3d8   : > { %v1291_v8 = vadd.f32 %v1501_v50, %v1290_v7 }
 0x3d9   : > { %v1596_v9 = vpop.f32.mrf.mxu1 }
 0x3da   : > { %v1295_v33 = vmin.f32 %v1291_v8, 0.0  ;;  %vm1294_vm2 = vcmp.gt.f32.partialorder %v1291_v8, 0.0 }
 0x3dc   : > { %v1296_v53 = vmul.f32 10.0, %v1295_v33 }
 0x3de   : > { %v1297_v59 = vmul.f32 1.442695, %v1296_v53 }
 0x3e0   : > { %1672 = vpow2.f32 %v1297_v59 }
 0x3ed   : > { %v1673_v54 = vpop.eup %1672 }
 0x3ee   : > { %v1502_v58 = vadd.f32 -1.0, %v1673_v54 }
 0x3f0   : > { %v1300_v11 = vmul.f32 0.1, %v1502_v58 }
 0x3f2   : > { %v1301_v12 = vsel %vm1294_vm2, %v1291_v8, %v1300_v11 }
 0x3f3   : > { %1614 = vmatmul.mubr.msk.f32.vlgmr.msra.gmra.mxu0 %vm1104_vm0, %v1301_v12 }
 0x4b3   : > { %v1386_v6 = vpop.f32.mrf.mxu0 }
 0x4b4   : > { %v1387_v20 = vadd.f32 %v1503_v2, %v1386_v6 }
 0x4b5   : > { %v1615_v46 = vpop.f32.mrf.mxu0 }
 0x4b6   : > { %v1397_v39 = vmul.f32 %v1505_v16, %v1387_v20 }
 0x4b8   : > { %v1399_v13 = vsel %vm1398_vm4, %v1397_v39, 0.0 }
 0x4b9   : > { %1400 = vadd.xlane.f32.xlu1 %v1399_v13 }
 0x542   : > { %v1401_v24 = vpop.xlane.xlu1 %1400 }
 0x543   : > { %v1402_v38 = vrot.slane %v1401_v24, 4 }
 0x545   : > { %v1403_v18 = vadd.f32 %v1402_v38, %v1401_v24 }
 0x547   : > { %v1404_v45 = vrot.slane %v1403_v18, 2 }
 0x549   : > { %v1405_v51 = vadd.f32 %v1404_v45, %v1403_v18 }
 0x54b   : > { %v1406_v36 = vrot.slane %v1405_v51, 1 }
 0x54d   : > { %v1407_v29 = vadd.f32 %v1406_v36, %v1405_v51 }
 0x54f   : > { %1409 = vst.msk [vmem:[%s386_s17] sm:$0x1] %vm1408_vm5, %v1407_v29 }
 0x550 PF: > { %s20_s13 = sadd.s32 1, %s1681_s13  }
 0x551   : > { %p17_p4 = scmp.ge.s32.totalorder %s20_s13, 4  }
 0x553   :  { %19 = sbr.rel (!%p17_p4) target bundleno = 1 (0x1), region = 96 }

</bundles_post_ra>
